<compile_context>
chip_gen: v7x
topology: tpu7x:2x2x1
jax: 0.10.0
libtpu: 0.0.40
codegen_flags: <defaults>
</compile_context>

<pallas_src>
import jax
import jax.numpy as jnp
from jax.experimental import pallas as pl
from jax.experimental.pallas import tpu as pltpu

INPUT_DIM = 1024
HIDDEN1 = 512
HIDDEN2 = 64
OUTPUT_DIM = 16  # len(prompt_list)

_ROW_ALIGN = 256  # row-tile granularity (multiple of 8 sublanes; amortizes grid overhead)


def _round_up(v, m):
    return (v + m - 1) // m * m


def _default_num_partitions():
    # Two TensorCores per chip only on v7x; single "parallel" partition elsewhere.
    try:
        kind = jax.devices()[0].device_kind.lower()
    except Exception:
        return 1
    return 2 if "v7" in kind else 1


def _make_kernel(tile_n, tiles_per_part, n_valid, needs_mask):
    def kernel(x_ref, w1_ref, b1_ref, w2_ref, b2_ref, w3_ref, o_ref, acc_ref):
        p = pl.program_id(0)   # partition (parallel)
        j = pl.program_id(1)   # row tile within partition (arbitrary / reduction)

        @pl.when(j == 0)
        def _():
            acc_ref[...] = jnp.zeros_like(acc_ref)

        # Layer 1: cast the streamed f32 tile to bf16 in-kernel (hides under the
        # MXU slot); accumulate in f32; bias + ReLU in f32.  dropout1 = identity.
        x_bf = x_ref[...].astype(jnp.bfloat16)
        h1 = jnp.dot(x_bf, w1_ref[...], preferred_element_type=jnp.float32)
        h1 = jnp.maximum(h1 + b1_ref[...], 0.0)

        # Layer 2: bf16 MXU matmul, f32 accumulate; bias + ReLU in f32.
        # dropout2 = identity at inference.
        h2 = jnp.dot(h1.astype(jnp.bfloat16), w2_ref[...],
                     preferred_element_type=jnp.float32)
        h2 = jnp.maximum(h2 + b2_ref[...], 0.0)

        if needs_mask:
            # Mask ragged / redundant rows.  Use the *unclamped* tile start so
            # duplicate blocks produced by the clamped index_map contribute
            # exactly zero (their unclamped row offsets are all >= n_valid).
            row0 = (p * tiles_per_part + j) * tile_n
            rows = row0 + jax.lax.broadcasted_iota(jnp.int32, (tile_n, 1), 0)
            h2 = jnp.where(rows < n_valid, h2, 0.0)

        # Accumulate the row-sum of this tile: (1, 64) running sum (VPU/XLU).
        acc_ref[...] += jnp.sum(h2, axis=0, keepdims=True)

        @pl.when(j == pl.num_programs(1) - 1)
        def _():
            # Output layer is linear: apply W3 once to the accumulated row-sum.
            partial = jnp.dot(acc_ref[...], w3_ref[...],
                              preferred_element_type=jnp.float32)  # (1, 16)
            o_ref[...] = partial.reshape(1, 1, OUTPUT_DIM)

    return kernel


def learn_weights_forward(x, params, *, tile_rows=2048, num_partitions=None):
    """x: (B, S, INPUT_DIM) float32 -> (OUTPUT_DIM,) float32"""
    w1, b1, w2, b2, w3, b3 = params
    B, S, F = x.shape
    assert F == INPUT_DIM
    N = B * S
    # Single HBM pass over x: no wrapper-side dtype cast, no jnp.pad.
    x2d = x.reshape(N, F)

    P = _default_num_partitions() if num_partitions is None else max(1, int(num_partitions))

    max_tile = _round_up(max(int(tile_rows), _ROW_ALIGN), _ROW_ALIGN)
    if N <= max_tile:
        tile_n = N  # single block equal to the full row extent (always legal, no ragged DMA)
    else:
        tile_n = max_tile
    total_tiles = pl.cdiv(N, tile_n)
    P = min(P, total_tiles)                # never give a partition zero real tiles
    tiles_per_part = pl.cdiv(total_tiles, P)
    covered = P * tiles_per_part * tile_n
    needs_mask = covered != N
    last_tile = total_tiles - 1

    # Weights are tiny: cast once in the wrapper, VMEM-resident via constant index_maps.
    w1_bf = w1.astype(jnp.bfloat16)
    w2_bf = w2.astype(jnp.bfloat16)

    kernel = _make_kernel(tile_n, tiles_per_part, N, needs_mask)

    def x_index_map(p, j):
        # Clamp so no DMA starts fully past the end of x; redundant (clamped)
        # tiles are zeroed by the in-kernel mask.
        return (jnp.minimum(p * tiles_per_part + j, last_tile), 0)

    # VMEM budget (bytes): x double-buffer (f32) + h1 f32/bf16 temps + h2 +
    # resident weights + headroom; capped to stay within v7x's 64 MiB physical.
    vmem_est = (2 * tile_n * INPUT_DIM * 4          # x double-buffer, f32
                + tile_n * HIDDEN1 * 6              # h1 f32 + bf16 temps
                + tile_n * HIDDEN2 * 8              # h2 + misc
                + (4 << 20))                        # weights + headroom
    vmem_limit = min(56 << 20, max(32 << 20, _round_up(vmem_est, 1 << 20)))

    cost = pl.CostEstimate(
        flops=2 * N * (INPUT_DIM * HIDDEN1 + HIDDEN1 * HIDDEN2)
              + 2 * P * HIDDEN2 * OUTPUT_DIM,
        transcendentals=0,
        bytes_accessed=(N * INPUT_DIM * 4
                        + INPUT_DIM * HIDDEN1 * 2 + HIDDEN1 * HIDDEN2 * 2
                        + (HIDDEN1 + HIDDEN2) * 4 + HIDDEN2 * OUTPUT_DIM * 4
                        + P * OUTPUT_DIM * 4),
    )

    partials = pl.pallas_call(
        kernel,
        out_shape=jax.ShapeDtypeStruct((P, 1, OUTPUT_DIM), jnp.float32),
        grid_spec=pltpu.PrefetchScalarGridSpec(
            num_scalar_prefetch=0,
            grid=(P, tiles_per_part),
            in_specs=[
                # x: the only large, pipelined input (f32, cast in-kernel).
                pl.BlockSpec((tile_n, INPUT_DIM), x_index_map),
                # Weights / biases: constant index_map -> VMEM-resident.
                pl.BlockSpec((INPUT_DIM, HIDDEN1), lambda p, j: (0, 0)),
                pl.BlockSpec((1, HIDDEN1), lambda p, j: (0, 0)),
                pl.BlockSpec((HIDDEN1, HIDDEN2), lambda p, j: (0, 0)),
                pl.BlockSpec((1, HIDDEN2), lambda p, j: (0, 0)),
                pl.BlockSpec((HIDDEN2, OUTPUT_DIM), lambda p, j: (0, 0)),
            ],
            # One (1, 16) partial result per partition; block index constant
            # across the reduction axis (written once at the last step).
            out_specs=pl.BlockSpec((1, 1, OUTPUT_DIM), lambda p, j: (p, 0, 0)),
            scratch_shapes=[pltpu.VMEM((1, HIDDEN2), jnp.float32)],
        ),
        compiler_params=pltpu.CompilerParams(
            dimension_semantics=("parallel", "arbitrary"),
            vmem_limit_bytes=vmem_limit,
        ),
        cost_estimate=cost,
    )(x2d, w1_bf, b1, w2_bf, b2, w3)

    # Combine partitions: mean over all B*S rows (single divide by the true N),
    # then add the output-layer bias.
    out = partials.reshape(P, OUTPUT_DIM).sum(axis=0) / jnp.float32(N) + b3[0]
    return out


def init_params(key):
    """Deterministic parameter init. Weights stored as (in_features, out_features)."""
    k1, k2, k3, k4, k5, k6 = jax.random.split(key, 6)

    def uniform(k, shape, fan_in):
        bound = 1.0 / jnp.sqrt(fan_in)
        return jax.random.uniform(k, shape, jnp.float32, -bound, bound)

    w1 = uniform(k1, (INPUT_DIM, HIDDEN1), INPUT_DIM)
    b1 = uniform(k2, (1, HIDDEN1), INPUT_DIM)
    w2 = uniform(k3, (HIDDEN1, HIDDEN2), HIDDEN1)
    b2 = uniform(k4, (1, HIDDEN2), HIDDEN1)
    w3 = uniform(k5, (HIDDEN2, OUTPUT_DIM), HIDDEN2)
    b3 = uniform(k6, (1, OUTPUT_DIM), HIDDEN2)
    return (w1, b1, w2, b2, w3, b3)


def _reference_f32(x, params):
    """Plain-JAX f32 reference of the PyTorch forward (eval mode)."""
    w1, b1, w2, b2, w3, b3 = params
    B, S, F = x.shape
    h = x.reshape(B * S, F)
    h = jnp.maximum(h @ w1 + b1, 0.0)
    h = jnp.maximum(h @ w2 + b2, 0.0)
    y = (h @ w3 + b3).reshape(B, S, OUTPUT_DIM)
    return y.mean(axis=1, keepdims=True).squeeze(1).mean(axis=0)


def _reference_bf16(x, params):
    """Reference mirroring the kernel's mixed precision (bf16 MXU, f32 accum)."""
    w1, b1, w2, b2, w3, b3 = params
    B, S, F = x.shape
    h = x.reshape(B * S, F).astype(jnp.bfloat16)
    h = jnp.maximum(
        jnp.dot(h, w1.astype(jnp.bfloat16), preferred_element_type=jnp.float32) + b1, 0.0)
    h = jnp.maximum(
        jnp.dot(h.astype(jnp.bfloat16), w2.astype(jnp.bfloat16),
                preferred_element_type=jnp.float32) + b2, 0.0)
    y = (jnp.dot(h, w3, preferred_element_type=jnp.float32) + b3).reshape(B, S, OUTPUT_DIM)
    return y.mean(axis=1).mean(axis=0)


if __name__ == "__main__":
    key = jax.random.PRNGKey(0)
    kx, kx2, kp = jax.random.split(key, 3)
    params = init_params(kp)

    # ---- primary small test (module's natural shapes): B=2, S=8, F=1024 ----
    B, S = 2, 8
    x = jax.random.normal(kx, (B, S, INPUT_DIM), jnp.float32)

    fwd = jax.jit(learn_weights_forward)
    out = jax.block_until_ready(fwd(x, params))

    assert out.shape == (OUTPUT_DIM,)
    ref_mixed = _reference_bf16(x, params)
    ref_f32 = _reference_f32(x, params)
    assert jnp.allclose(out, ref_mixed, atol=2e-3, rtol=2e-3), (out, ref_mixed)
    assert jnp.allclose(out, ref_f32, atol=2e-2, rtol=2e-2), (out, ref_f32)

    # ---- secondary test: exercise ragged last tile + clamped redundant tiles ----
    B2, S2 = 4, 150  # N = 600 rows; tile_rows=256 -> 3 tiles, P=2 -> 1 clamped tile
    x2 = jax.random.normal(kx2, (B2, S2, INPUT_DIM), jnp.float32)
    fwd2 = jax.jit(lambda a, p: learn_weights_forward(a, p, tile_rows=256, num_partitions=2))
    out2 = jax.block_until_ready(fwd2(x2, params))
    ref2 = _reference_bf16(x2, params)
    assert out2.shape == (OUTPUT_DIM,)
    assert jnp.allclose(out2, ref2, atol=2e-3, rtol=2e-3), (out2, ref2)

    print("KERNEL_OK")
</pallas_src>

<mosaic_0001>
module attributes {stable_mosaic.version = 11 : i64} {
  func.func @kernel(%arg0: i32, %arg1: i32, %arg2: memref<16x1024xf32, #tpu.memory_space<vmem>>, %arg3: memref<1024x512xbf16, #tpu.memory_space<vmem>>, %arg4: memref<1x512xf32, #tpu.memory_space<vmem>>, %arg5: memref<512x64xbf16, #tpu.memory_space<vmem>>, %arg6: memref<1x64xf32, #tpu.memory_space<vmem>>, %arg7: memref<64x16xf32, #tpu.memory_space<vmem>>, %arg8: memref<1x1x16xf32, #tpu.memory_space<vmem>>, %arg9: memref<1x64xf32, #tpu.memory_space<vmem>>) attributes {dimension_semantics = [#tpu.dimension_semantics<parallel>, #tpu.dimension_semantics<arbitrary>], iteration_bounds = array<i64: 1, 1>, scalar_prefetch = 0 : i64, scratch_operands = 1 : i64, tpu.core_type = #tpu.core_type<tc>, window_params = [{transform_indices = @transform_0, window_bounds = array<i64: 16, 1024>}, {pipeline_mode = #tpu.pipeline_mode<synchronous>, transform_indices = @transform_1, window_bounds = array<i64: 1024, 512>}, {pipeline_mode = #tpu.pipeline_mode<synchronous>, transform_indices = @transform_2, window_bounds = array<i64: 1, 512>}, {pipeline_mode = #tpu.pipeline_mode<synchronous>, transform_indices = @transform_3, window_bounds = array<i64: 512, 64>}, {pipeline_mode = #tpu.pipeline_mode<synchronous>, transform_indices = @transform_4, window_bounds = array<i64: 1, 64>}, {pipeline_mode = #tpu.pipeline_mode<synchronous>, transform_indices = @transform_5, window_bounds = array<i64: 64, 16>}, {transform_indices = @transform_6, window_bounds = array<i64: 1, 1, 16>}]} {
    %c0_i32 = arith.constant 0 : i32
    %0 = arith.cmpi eq, %arg1, %c0_i32 : i32
    %1 = arith.extui %0 : i1 to i32
    %c0_i32_0 = arith.constant 0 : i32
    %2 = arith.cmpi ne, %1, %c0_i32_0 : i32
    scf.if %2 {
      %cst_20 = arith.constant 0.000000e+00 : f32
      %28 = vector.broadcast %cst_20 : f32 to vector<1x64xf32>
      %c0_21 = arith.constant 0 : index
      %c0_22 = arith.constant 0 : index
      %29 = vector.load %arg9[%c0_21, %c0_22] : memref<1x64xf32, #tpu.memory_space<vmem>>, vector<1x64xf32>
      tpu.vector_store %arg9[%c0_21, %c0_22], %28 {strides = array<i32>} : memref<1x64xf32, #tpu.memory_space<vmem>>, vector<1x64xf32>,
    } else {
    }
    %c0 = arith.constant 0 : index
    %c0_1 = arith.constant 0 : index
    %3 = vector.load %arg2[%c0, %c0_1] : memref<16x1024xf32, #tpu.memory_space<vmem>>, vector<16x1024xf32>
    %4 = arith.truncf %3 : vector<16x1024xf32> to vector<16x1024xbf16>
    %c0_2 = arith.constant 0 : index
    %c0_3 = arith.constant 0 : index
    %5 = vector.load %arg3[%c0_2, %c0_3] : memref<1024x512xbf16, #tpu.memory_space<vmem>>, vector<1024x512xbf16>
    %cst = arith.constant dense<0.000000e+00> : vector<16x512xf32>
    %6 = tpu.matmul %4, %5, %cst {dimension_numbers = #tpu.dot_dimension_numbers<[1], [0], [0], [1], [0, 0, 1, 1], [], []>} : vector<16x1024xbf16>, vector<1024x512xbf16>, vector<16x512xf32> -> vector<16x512xf32>
    %c0_4 = arith.constant 0 : index
    %c0_5 = arith.constant 0 : index
    %7 = vector.load %arg4[%c0_4, %c0_5] : memref<1x512xf32, #tpu.memory_space<vmem>>, vector<1x512xf32>
    %8 = vector.broadcast %7 : vector<1x512xf32> to vector<16x512xf32>
    %9 = arith.addf %6, %8 : vector<16x512xf32>
    %cst_6 = arith.constant 0.000000e+00 : f32
    %10 = vector.broadcast %cst_6 : f32 to vector<16x512xf32>
    %11 = arith.maximumf %9, %10 : vector<16x512xf32>
    %12 = arith.truncf %11 : vector<16x512xf32> to vector<16x512xbf16>
    %c0_7 = arith.constant 0 : index
    %c0_8 = arith.constant 0 : index
    %13 = vector.load %arg5[%c0_7, %c0_8] : memref<512x64xbf16, #tpu.memory_space<vmem>>, vector<512x64xbf16>
    %cst_9 = arith.constant dense<0.000000e+00> : vector<16x64xf32>
    %14 = tpu.matmul %12, %13, %cst_9 {dimension_numbers = #tpu.dot_dimension_numbers<[1], [0], [0], [1], [0, 0, 1, 1], [], []>} : vector<16x512xbf16>, vector<512x64xbf16>, vector<16x64xf32> -> vector<16x64xf32>
    %c0_10 = arith.constant 0 : index
    %c0_11 = arith.constant 0 : index
    %15 = vector.load %arg6[%c0_10, %c0_11] : memref<1x64xf32, #tpu.memory_space<vmem>>, vector<1x64xf32>
    %16 = vector.broadcast %15 : vector<1x64xf32> to vector<16x64xf32>
    %17 = arith.addf %14, %16 : vector<16x64xf32>
    %cst_12 = arith.constant 0.000000e+00 : f32
    %18 = vector.broadcast %cst_12 : f32 to vector<16x64xf32>
    %19 = arith.maximumf %17, %18 : vector<16x64xf32>
    %c0_13 = arith.constant 0 : index
    %c0_14 = arith.constant 0 : index
    %20 = vector.load %arg9[%c0_13, %c0_14] : memref<1x64xf32, #tpu.memory_space<vmem>>, vector<1x64xf32>
    %cst_15 = arith.constant dense<0.000000e+00> : vector<64xf32>
    %21 = vector.multi_reduction <add>, %19, %cst_15 [0] : vector<16x64xf32> to vector<64xf32>
    %22 = vector.shape_cast %21 : vector<64xf32> to vector<1x64xf32>
    %23 = arith.addf %20, %22 : vector<1x64xf32>
    %c0_16 = arith.constant 0 : index
    %c0_17 = arith.constant 0 : index
    %24 = vector.load %arg9[%c0_16, %c0_17] : memref<1x64xf32, #tpu.memory_space<vmem>>, vector<1x64xf32>
    tpu.vector_store %arg9[%c0_16, %c0_17], %23 {strides = array<i32>} : memref<1x64xf32, #tpu.memory_space<vmem>>, vector<1x64xf32>,
    %c0_i32_18 = arith.constant 0 : i32
    %25 = arith.cmpi eq, %arg1, %c0_i32_18 : i32
    %26 = arith.extui %25 : i1 to i32
    %c0_i32_19 = arith.constant 0 : i32
    %27 = arith.cmpi ne, %26, %c0_i32_19 : i32
    scf.if %27 {
      %c0_20 = arith.constant 0 : index
      %c0_21 = arith.constant 0 : index
      %28 = vector.load %arg9[%c0_20, %c0_21] : memref<1x64xf32, #tpu.memory_space<vmem>>, vector<1x64xf32>
      %c0_22 = arith.constant 0 : index
      %c0_23 = arith.constant 0 : index
      %29 = vector.load %arg7[%c0_22, %c0_23] : memref<64x16xf32, #tpu.memory_space<vmem>>, vector<64x16xf32>
      %cst_24 = arith.constant dense<0.000000e+00> : vector<1x16xf32>
      %30 = tpu.matmul %28, %29, %cst_24 {dimension_numbers = #tpu.dot_dimension_numbers<[1], [0], [0], [1], [0, 0, 1, 1], [], []>} : vector<1x64xf32>, vector<64x16xf32>, vector<1x16xf32> -> vector<1x16xf32>
      %31 = vector.shape_cast %30 : vector<1x16xf32> to vector<1x1x16xf32>
      %c0_25 = arith.constant 0 : index
      %c0_26 = arith.constant 0 : index
      %c0_27 = arith.constant 0 : index
      %32 = vector.load %arg8[%c0_25, %c0_26, %c0_27] : memref<1x1x16xf32, #tpu.memory_space<vmem>>, vector<1x1x16xf32>
      tpu.vector_store %arg8[%c0_25, %c0_26, %c0_27], %31 {strides = array<i32>} : memref<1x1x16xf32, #tpu.memory_space<vmem>>, vector<1x1x16xf32>,
    } else {
    }
    return
  }
  func.func @transform_0(%arg0: i32, %arg1: i32) -> (i32, i32) {
    %c1_i32 = arith.constant 1 : i32
    %0 = arith.muli %arg0, %c1_i32 : i32
    %1 = arith.addi %0, %arg1 : i32
    %c0_i32 = arith.constant 0 : i32
    %2 = arith.minsi %1, %c0_i32 : i32
    %c0_i32_0 = arith.constant 0 : i32
    %c0_i32_1 = arith.constant 0 : i32
    return %2, %c0_i32_0 : i32, i32
  }
  func.func @transform_1(%arg0: i32, %arg1: i32) -> (i32, i32) {
    %c0_i32 = arith.constant 0 : i32
    %c0_i32_0 = arith.constant 0 : i32
    %c0_i32_1 = arith.constant 0 : i32
    return %c0_i32, %c0_i32_0 : i32, i32
  }
  func.func @transform_2(%arg0: i32, %arg1: i32) -> (i32, i32) {
    %c0_i32 = arith.constant 0 : i32
    %c0_i32_0 = arith.constant 0 : i32
    %c0_i32_1 = arith.constant 0 : i32
    return %c0_i32, %c0_i32_0 : i32, i32
  }
  func.func @transform_3(%arg0: i32, %arg1: i32) -> (i32, i32) {
    %c0_i32 = arith.constant 0 : i32
    %c0_i32_0 = arith.constant 0 : i32
    %c0_i32_1 = arith.constant 0 : i32
    return %c0_i32, %c0_i32_0 : i32, i32
  }
  func.func @transform_4(%arg0: i32, %arg1: i32) -> (i32, i32) {
    %c0_i32 = arith.constant 0 : i32
    %c0_i32_0 = arith.constant 0 : i32
    %c0_i32_1 = arith.constant 0 : i32
    return %c0_i32, %c0_i32_0 : i32, i32
  }
  func.func @transform_5(%arg0: i32, %arg1: i32) -> (i32, i32) {
    %c0_i32 = arith.constant 0 : i32
    %c0_i32_0 = arith.constant 0 : i32
    %c0_i32_1 = arith.constant 0 : i32
    return %c0_i32, %c0_i32_0 : i32, i32
  }
  func.func @transform_6(%arg0: i32, %arg1: i32) -> (i32, i32, i32) {
    %c0_i32 = arith.constant 0 : i32
    %c0_i32_0 = arith.constant 0 : i32
    %c0_i32_1 = arith.constant 0 : i32
    return %arg0, %c0_i32, %c0_i32_0 : i32, i32, i32
  }
}

</mosaic_0001>

<bundles_post_ra>
// kernel: learn_weights_forward.1
= control target key start
LH: loop header
LB: loop body
LE: loop exit
PB: predicated region body
PF: predicated region fallthrough
CT: control target
= control target key end

     0   :  { %vm63_vm0 = vcmask 516096   ;;  %vm3288_vm1 = vmmov 0   ;;  %vm2351_vm2 = vcmask 523264   ;;  %vm2449_vm3 = vcmask 122880   ;;  %s4271_s1 = inlined_call_operand.vmem [shape: bf16[1024,512], index: 1, kind: input, shape index: {}]   ;;  %s4272_s0 = inlined_call_operand.vmem [shape: f32[16,1024], index: 0, kind: input, shape index: {}]   ;;  %s4273_s3 = inlined_call_operand.vmem [shape: bf16[512,64], index: 3, kind: input, shape index: {}]   ;;  %s4274_s2 = inlined_call_operand.vmem [shape: f32[1,512], index: 2, kind: input, shape index: {}]   ;;  %s4275_s5 = inlined_call_operand.vmem [shape: f32[64,16], index: 5, kind: input, shape index: {}]   ;;  %s4276_s4 = inlined_call_operand.vmem [shape: f32[1,64], index: 4, kind: input, shape index: {}]   ;;  %s4277_s6 = inlined_call_operand.vmem [shape: f32[1,1,16], index: 6, kind: output, shape index: {}]  }
   0x1   :  { %v2870_v0 = vld [vmem:[%s4271_s1 + $0x4] ss:$16 sps:$4 sm:$0xff]   ;;  %v2872_v1 = vld [vmem:[%s4271_s1 + $0xc] ss:$16 sps:$4 sm:$0xff]   ;;  %v2874_v2 = vld [vmem:[%s4271_s1] ss:$16 sps:$4 sm:$0xff]  }
   0x2   :  { %1647 = vmatprep.subr.bf16.mxu0 %v2870_v0  ;;  %v2875_v3 = vld [vmem:[%s4271_s1 + $0x8] ss:$16 sps:$4 sm:$0xff]   ;;  %1819 = vmatprep.subr.bf16.mxu1 %v2872_v1  ;;  %v2876_v4 = vld [vmem:[%s4271_s1 + $0x24] ss:$16 sps:$4 sm:$0xff]   ;;  %v2878_v5 = vld [vmem:[%s4271_s1 + $0x2c] ss:$16 sps:$4 sm:$0xff]  }
   0x3   :  { %1648 = vmatpush1.bf16.msra.mxu0 %v2874_v2  ;;  %1820 = vmatpush1.bf16.msra.mxu1 %v2875_v3  ;;  %v2880_v6 = vld [vmem:[%s4271_s1 + $0x20] ss:$16 sps:$4 sm:$0xff]   ;;  %v2881_v7 = vld [vmem:[%s4271_s1 + $0x28] ss:$16 sps:$4 sm:$0xff]   ;;  %v2882_v8 = vld [vmem:[%s4271_s1 + $0x44] ss:$16 sps:$4 sm:$0xff]  }
   0x4   :  { %1649 = vmatprep.subr.bf16.mxu0 %v2876_v4  ;;  %1821 = vmatprep.subr.bf16.mxu1 %v2878_v5  ;;  %v2884_v9 = vld [vmem:[%s4271_s1 + $0x4c] ss:$16 sps:$4 sm:$0xff]   ;;  %v2886_v10 = vld [vmem:[%s4271_s1 + $0x40] ss:$16 sps:$4 sm:$0xff]   ;;  %v2887_v11 = vld [vmem:[%s4271_s1 + $0x48] ss:$16 sps:$4 sm:$0xff]  }
   0x5   :  { %v2888_v12 = vld [vmem:[%s4271_s1 + $0x64] ss:$16 sps:$4 sm:$0xff]   ;;  %v2890_v13 = vld [vmem:[%s4271_s1 + $0x6c] ss:$16 sps:$4 sm:$0xff]   ;;  %v2892_v14 = vld [vmem:[%s4271_s1 + $0x60] ss:$16 sps:$4 sm:$0xff]  }
   0x6   :  { %v2893_v15 = vld [vmem:[%s4271_s1 + $0x68] ss:$16 sps:$4 sm:$0xff]   ;;  %v2894_v16 = vld [vmem:[%s4271_s1 + $0x84] ss:$16 sps:$4 sm:$0xff]   ;;  %v2896_v17 = vld [vmem:[%s4271_s1 + $0x8c] ss:$16 sps:$4 sm:$0xff]  }
   0x7   :  { %1650 = vmatpush1.bf16.msra.mxu0 %v2880_v6  ;;  %1822 = vmatpush1.bf16.msra.mxu1 %v2881_v7  ;;  %v2898_v18 = vld [vmem:[%s4271_s1 + $0x80] ss:$16 sps:$4 sm:$0xff]   ;;  %v2899_v19 = vld [vmem:[%s4271_s1 + $0x88] ss:$16 sps:$4 sm:$0xff]   ;;  %v2900_v20 = vld [vmem:[%s4271_s1 + $0xa4] ss:$16 sps:$4 sm:$0xff]  }
   0x8   :  { %1651 = vmatprep.subr.bf16.mxu0 %v2882_v8  ;;  %1823 = vmatprep.subr.bf16.mxu1 %v2884_v9  ;;  %v2902_v21 = vld [vmem:[%s4271_s1 + $0xac] ss:$16 sps:$4 sm:$0xff]   ;;  %v2904_v22 = vld [vmem:[%s4271_s1 + $0xa0] ss:$16 sps:$4 sm:$0xff]   ;;  %v2905_v23 = vld [vmem:[%s4271_s1 + $0xa8] ss:$16 sps:$4 sm:$0xff]  }
   0x9   :  { %v2906_v24 = vld [vmem:[%s4271_s1 + $0xc4] ss:$16 sps:$4 sm:$0xff]   ;;  %v2908_v25 = vld [vmem:[%s4271_s1 + $0xcc] ss:$16 sps:$4 sm:$0xff]   ;;  %v2910_v26 = vld [vmem:[%s4271_s1 + $0xc0] ss:$16 sps:$4 sm:$0xff]  }
   0xa   :  { %v2911_v27 = vld [vmem:[%s4271_s1 + $0xc8] ss:$16 sps:$4 sm:$0xff]   ;;  %v2912_v28 = vld [vmem:[%s4271_s1 + $0xe4] ss:$16 sps:$4 sm:$0xff]   ;;  %v2914_v29 = vld [vmem:[%s4271_s1 + $0xec] ss:$16 sps:$4 sm:$0xff]  }
   0xb   :  { %1652 = vmatpush1.bf16.msra.mxu0 %v2886_v10  ;;  %1824 = vmatpush1.bf16.msra.mxu1 %v2887_v11  ;;  %v2916_v30 = vld [vmem:[%s4271_s1 + $0xe0] ss:$16 sps:$4 sm:$0xff]   ;;  %v2917_v31 = vld [vmem:[%s4271_s1 + $0xe8] ss:$16 sps:$4 sm:$0xff]   ;;  %v2918_v32 = vld [vmem:[%s4271_s1 + $0x104] ss:$16 sps:$4 sm:$0xff]  }
   0xc   :  { %1653 = vmatprep.subr.bf16.mxu0 %v2888_v12  ;;  %1825 = vmatprep.subr.bf16.mxu1 %v2890_v13  ;;  %v2920_v33 = vld [vmem:[%s4271_s1 + $0x10c] ss:$16 sps:$4 sm:$0xff]   ;;  %v2922_v34 = vld [vmem:[%s4271_s1 + $0x100] ss:$16 sps:$4 sm:$0xff]   ;;  %v2923_v35 = vld [vmem:[%s4271_s1 + $0x108] ss:$16 sps:$4 sm:$0xff]  }
   0xd   :  { %v2924_v36 = vld [vmem:[%s4271_s1 + $0x124] ss:$16 sps:$4 sm:$0xff]   ;;  %v2926_v37 = vld [vmem:[%s4271_s1 + $0x12c] ss:$16 sps:$4 sm:$0xff]   ;;  %v2928_v38 = vld [vmem:[%s4271_s1 + $0x120] ss:$16 sps:$4 sm:$0xff]  }
   0xe   :  { %v2929_v39 = vld [vmem:[%s4271_s1 + $0x128] ss:$16 sps:$4 sm:$0xff]   ;;  %v2930_v40 = vld [vmem:[%s4271_s1 + $0x144] ss:$16 sps:$4 sm:$0xff]   ;;  %v2932_v41 = vld [vmem:[%s4271_s1 + $0x14c] ss:$16 sps:$4 sm:$0xff]  }
   0xf   :  { %1654 = vmatpush1.bf16.msra.mxu0 %v2892_v14  ;;  %1826 = vmatpush1.bf16.msra.mxu1 %v2893_v15  ;;  %v2934_v42 = vld [vmem:[%s4271_s1 + $0x140] ss:$16 sps:$4 sm:$0xff]   ;;  %v2935_v43 = vld [vmem:[%s4271_s1 + $0x148] ss:$16 sps:$4 sm:$0xff]   ;;  %v2936_v44 = vld [vmem:[%s4271_s1 + $0x164] ss:$16 sps:$4 sm:$0xff]  }
  0x10   :  { %1655 = vmatprep.subr.bf16.mxu0 %v2894_v16  ;;  %1827 = vmatprep.subr.bf16.mxu1 %v2896_v17  ;;  %v2938_v45 = vld [vmem:[%s4271_s1 + $0x16c] ss:$16 sps:$4 sm:$0xff]   ;;  %v2940_v48 = vld [vmem:[%s4271_s1 + $0x160] ss:$16 sps:$4 sm:$0xff]   ;;  %v2941_v49 = vld [vmem:[%s4271_s1 + $0x168] ss:$16 sps:$4 sm:$0xff]  }
  0x11   :  { %v66_v46 = vld [vmem:[%s4272_s0 + $0x8] sm:$0xff]  ;;  %v2942_v51 = vld [vmem:[%s4271_s1 + $0x184] ss:$16 sps:$4 sm:$0xff]   ;;  %v2946_v53 = vld [vmem:[%s4271_s1 + $0x180] ss:$16 sps:$4 sm:$0xff]  }
  0x12   :  { %v74_v47 = vld [vmem:[%s4272_s0 + $0x48] sm:$0xff]  ;;  %v2948_v55 = vld [vmem:[%s4271_s1 + $0x1a4] ss:$16 sps:$4 sm:$0xff]   ;;  %v2952_v57 = vld [vmem:[%s4271_s1 + $0x1a0] ss:$16 sps:$4 sm:$0xff]  }
  0x13   :  { %1656 = vmatpush1.bf16.msra.mxu0 %v2898_v18  ;;  %1828 = vmatpush1.bf16.msra.mxu1 %v2899_v19  ;;  %v82_v50 = vpack.c.bf16 %v74_v47, %v66_v46  ;;  %v2944_v52 = vld [vmem:[%s4271_s1 + $0x18c] ss:$16 sps:$4 sm:$0xff]   ;;  %v2947_v54 = vld [vmem:[%s4271_s1 + $0x188] ss:$16 sps:$4 sm:$0xff]   ;;  %v2954_v59 = vld [vmem:[%s4271_s1 + $0x1c4] ss:$16 sps:$4 sm:$0xff]  }
  0x14   :  { %1657 = vmatprep.subr.bf16.mxu0 %v2900_v20  ;;  %1829 = vmatprep.subr.bf16.mxu1 %v2902_v21  ;;  %v2950_v56 = vld [vmem:[%s4271_s1 + $0x1ac] ss:$16 sps:$4 sm:$0xff]   ;;  %v2953_v58 = vld [vmem:[%s4271_s1 + $0x1a8] ss:$16 sps:$4 sm:$0xff]   ;;  %v2958_v61 = vld [vmem:[%s4271_s1 + $0x1c0] ss:$16 sps:$4 sm:$0xff]  }
  0x15   :  { %1679 = vmatprep.mubr.bf16.mxu0 %v82_v50  ;;  %1851 = vmatprep.mubr.bf16.mxu1 %v82_v50  ;;  %v2956_v60 = vld [vmem:[%s4271_s1 + $0x1cc] ss:$16 sps:$4 sm:$0xff]   ;;  %v2959_v62 = vld [vmem:[%s4271_s1 + $0x1c8] ss:$16 sps:$4 sm:$0xff]   ;;  %v2960_v63 = vld [vmem:[%s4271_s1 + $0x1e4] ss:$16 sps:$4 sm:$0xff]  }
  0x16   :  { %v2962_v0 = vld [vmem:[%s4271_s1 + $0x1ec] ss:$16 sps:$4 sm:$0xff]   ;;  %v2964_v1 = vld [vmem:[%s4271_s1 + $0x1e0] ss:$16 sps:$4 sm:$0xff]   ;;  %v2965_v2 = vld [vmem:[%s4271_s1 + $0x1e8] ss:$16 sps:$4 sm:$0xff]  }
  0x17   :  { %1658 = vmatpush1.bf16.msra.mxu0 %v2904_v22  ;;  %1830 = vmatpush1.bf16.msra.mxu1 %v2905_v23  ;;  %v2968_v3 = vld [vmem:[%s4271_s1 + $0x204] ss:$16 sps:$4 sm:$0xff]   ;;  %v2971_v6 = vld [vmem:[%s4271_s1 + $0x20c] ss:$16 sps:$4 sm:$0xff]   ;;  %v2966_v7 = vld [vmem:[%s4271_s1 + $0x200] ss:$16 sps:$4 sm:$0xff]  }
  0x18   :  { %1659 = vmatprep.subr.bf16.mxu0 %v2906_v24  ;;  %1831 = vmatprep.subr.bf16.mxu1 %v2908_v25  ;;  %v65_v4 = vld [vmem:[%s4272_s0] sm:$0xff]  ;;  %v2969_v8 = vld [vmem:[%s4271_s1 + $0x208] ss:$16 sps:$4 sm:$0xff]   ;;  %v2977_v11 = vld [vmem:[%s4271_s1 + $0x22c] ss:$16 sps:$4 sm:$0xff]  }
  0x19   :  { %v73_v5 = vld [vmem:[%s4272_s0 + $0x40] sm:$0xff]  ;;  %v2975_v13 = vld [vmem:[%s4271_s1 + $0x228] ss:$16 sps:$4 sm:$0xff]   ;;  %v2983_v15 = vld [vmem:[%s4271_s1 + $0x24c] ss:$16 sps:$4 sm:$0xff]  }
  0x1a   :  { %v81_v9 = vpack.c.bf16 %v73_v5, %v65_v4  ;;  %v2974_v10 = vld [vmem:[%s4271_s1 + $0x224] ss:$16 sps:$4 sm:$0xff]   ;;  %v2972_v12 = vld [vmem:[%s4271_s1 + $0x220] ss:$16 sps:$4 sm:$0xff]   ;;  %v2981_v17 = vld [vmem:[%s4271_s1 + $0x248] ss:$16 sps:$4 sm:$0xff]  }
  0x1b   :  { %1660 = vmatpush1.bf16.msra.mxu0 %v2910_v26  ;;  %1832 = vmatpush1.bf16.msra.mxu1 %v2911_v27  ;;  %v2980_v14 = vld [vmem:[%s4271_s1 + $0x244] ss:$16 sps:$4 sm:$0xff]   ;;  %v2978_v16 = vld [vmem:[%s4271_s1 + $0x240] ss:$16 sps:$4 sm:$0xff]   ;;  %v2989_v19 = vld [vmem:[%s4271_s1 + $0x26c] ss:$16 sps:$4 sm:$0xff]  }
  0x1c   :  { %1661 = vmatprep.subr.bf16.mxu0 %v2912_v28  ;;  %1833 = vmatprep.subr.bf16.mxu1 %v2914_v29  ;;  %v2986_v18 = vld [vmem:[%s4271_s1 + $0x264] ss:$16 sps:$4 sm:$0xff]   ;;  %v2984_v20 = vld [vmem:[%s4271_s1 + $0x260] ss:$16 sps:$4 sm:$0xff]   ;;  %v2987_v21 = vld [vmem:[%s4271_s1 + $0x268] ss:$16 sps:$4 sm:$0xff]  }
  0x1d   :  { %v2992_v22 = vld [vmem:[%s4271_s1 + $0x284] ss:$16 sps:$4 sm:$0xff]   ;;  %v2995_v23 = vld [vmem:[%s4271_s1 + $0x28c] ss:$16 sps:$4 sm:$0xff]   ;;  %v2990_v24 = vld [vmem:[%s4271_s1 + $0x280] ss:$16 sps:$4 sm:$0xff]  }
  0x1e   :  { %v2993_v25 = vld [vmem:[%s4271_s1 + $0x288] ss:$16 sps:$4 sm:$0xff]   ;;  %v2998_v26 = vld [vmem:[%s4271_s1 + $0x2a4] ss:$16 sps:$4 sm:$0xff]   ;;  %v3001_v27 = vld [vmem:[%s4271_s1 + $0x2ac] ss:$16 sps:$4 sm:$0xff]  }
  0x1f   :  { %1662 = vmatpush1.bf16.msra.mxu0 %v2916_v30  ;;  %1834 = vmatpush1.bf16.msra.mxu1 %v2917_v31  ;;  %v2996_v28 = vld [vmem:[%s4271_s1 + $0x2a0] ss:$16 sps:$4 sm:$0xff]   ;;  %v2999_v29 = vld [vmem:[%s4271_s1 + $0x2a8] ss:$16 sps:$4 sm:$0xff]   ;;  %v3004_v30 = vld [vmem:[%s4271_s1 + $0x2c4] ss:$16 sps:$4 sm:$0xff]  }
  0x20   :  { %1663 = vmatprep.subr.bf16.mxu0 %v2918_v32  ;;  %1835 = vmatprep.subr.bf16.mxu1 %v2920_v33  ;;  %v3007_v31 = vld [vmem:[%s4271_s1 + $0x2cc] ss:$16 sps:$4 sm:$0xff]   ;;  %v3020_v47 = vld [vmem:[%s4271_s1 + $0x320] ss:$16 sps:$4 sm:$0xff]   ;;  %v3053_v4 = vld [vmem:[%s4271_s1 + $0x3c8] ss:$16 sps:$4 sm:$0xff]  }
  0x21   :  { %v68_v32 = vld [vmem:[%s4272_s0 + $0x18] sm:$0xff]  ;;  %v3058_v5 = vld [vmem:[%s4271_s1 + $0x3e4] ss:$16 sps:$4 sm:$0xff]  }
  0x22   :  { %v76_v33 = vld [vmem:[%s4272_s0 + $0x58] sm:$0xff] }
  0x23   :  { %1664 = vmatpush1.bf16.msra.mxu0 %v2922_v34  ;;  %1836 = vmatpush1.bf16.msra.mxu1 %v2923_v35  ;;  %v3002_v34 = vld [vmem:[%s4271_s1 + $0x2c0] ss:$16 sps:$4 sm:$0xff]   ;;  %v3005_v35 = vld [vmem:[%s4271_s1 + $0x2c8] ss:$16 sps:$4 sm:$0xff]   ;;  %v3025_v46 = vld [vmem:[%s4271_s1 + $0x32c] ss:$16 sps:$4 sm:$0xff]  }
  0x24   :  { %1665 = vmatprep.subr.bf16.mxu0 %v2924_v36  ;;  %1837 = vmatprep.subr.bf16.mxu1 %v2926_v37  ;;  %v84_v36 = vpack.c.bf16 %v76_v33, %v68_v32  ;;  %v3010_v37 = vld [vmem:[%s4271_s1 + $0x2e4] ss:$16 sps:$4 sm:$0xff]   ;;  %v3031_v50 = vld [vmem:[%s4271_s1 + $0x34c] ss:$16 sps:$4 sm:$0xff]   ;;  %v3086_v33 = vld [vmem:[%s4271_s1 + $0x480] ss:$16 sps:$4 sm:$0xff]  }
  0x25   :  { %v3091_v32 = vld [vmem:[%s4271_s1 + $0x48c] ss:$16 sps:$4 sm:$0xff]  }
  0x27   :  { %1666 = vmatpush1.bf16.msra.mxu0 %v2928_v38  ;;  %1838 = vmatpush1.bf16.msra.mxu1 %v2929_v39  ;;  %v3013_v38 = vld [vmem:[%s4271_s1 + $0x2ec] ss:$16 sps:$4 sm:$0xff]   ;;  %v3008_v39 = vld [vmem:[%s4271_s1 + $0x2e0] ss:$16 sps:$4 sm:$0xff]  }
  0x28   :  { %1667 = vmatprep.subr.bf16.mxu0 %v2930_v40  ;;  %1839 = vmatprep.subr.bf16.mxu1 %v2932_v41  ;;  %v3011_v40 = vld [vmem:[%s4271_s1 + $0x2e8] ss:$16 sps:$4 sm:$0xff]   ;;  %v3016_v41 = vld [vmem:[%s4271_s1 + $0x304] ss:$16 sps:$4 sm:$0xff]  }
  0x2b   :  { %1668 = vmatpush1.bf16.msra.mxu0 %v2934_v42  ;;  %1840 = vmatpush1.bf16.msra.mxu1 %v2935_v43  ;;  %v3019_v42 = vld [vmem:[%s4271_s1 + $0x30c] ss:$16 sps:$4 sm:$0xff]   ;;  %v3014_v43 = vld [vmem:[%s4271_s1 + $0x300] ss:$16 sps:$4 sm:$0xff]  }
  0x2c   :  { %1669 = vmatprep.subr.bf16.mxu0 %v2936_v44  ;;  %1841 = vmatprep.subr.bf16.mxu1 %v2938_v45  ;;  %v3017_v44 = vld [vmem:[%s4271_s1 + $0x308] ss:$16 sps:$4 sm:$0xff]   ;;  %v3022_v45 = vld [vmem:[%s4271_s1 + $0x324] ss:$16 sps:$4 sm:$0xff]  }
  0x2f   :  { %1670 = vmatpush1.bf16.msra.mxu0 %v2940_v48  ;;  %1842 = vmatpush1.bf16.msra.mxu1 %v2941_v49  ;;  %v3023_v48 = vld [vmem:[%s4271_s1 + $0x328] ss:$16 sps:$4 sm:$0xff]   ;;  %v3028_v49 = vld [vmem:[%s4271_s1 + $0x344] ss:$16 sps:$4 sm:$0xff]  }
  0x30   :  { %1671 = vmatprep.subr.bf16.mxu0 %v2942_v51  ;;  %1843 = vmatprep.subr.bf16.mxu1 %v2944_v52  ;;  %v3026_v51 = vld [vmem:[%s4271_s1 + $0x340] ss:$16 sps:$4 sm:$0xff]   ;;  %v3029_v52 = vld [vmem:[%s4271_s1 + $0x348] ss:$16 sps:$4 sm:$0xff]  }
  0x33   :  { %1672 = vmatpush1.bf16.msra.mxu0 %v2946_v53  ;;  %1844 = vmatpush1.bf16.msra.mxu1 %v2947_v54  ;;  %v3034_v53 = vld [vmem:[%s4271_s1 + $0x364] ss:$16 sps:$4 sm:$0xff]   ;;  %v3037_v54 = vld [vmem:[%s4271_s1 + $0x36c] ss:$16 sps:$4 sm:$0xff]  }
  0x34   :  { %1673 = vmatprep.subr.bf16.mxu0 %v2948_v55  ;;  %1845 = vmatprep.subr.bf16.mxu1 %v2950_v56  ;;  %v3032_v55 = vld [vmem:[%s4271_s1 + $0x360] ss:$16 sps:$4 sm:$0xff]   ;;  %v3035_v56 = vld [vmem:[%s4271_s1 + $0x368] ss:$16 sps:$4 sm:$0xff]  }
  0x37   :  { %1674 = vmatpush1.bf16.msra.mxu0 %v2952_v57  ;;  %1846 = vmatpush1.bf16.msra.mxu1 %v2953_v58  ;;  %v3040_v57 = vld [vmem:[%s4271_s1 + $0x384] ss:$16 sps:$4 sm:$0xff]   ;;  %v3043_v58 = vld [vmem:[%s4271_s1 + $0x38c] ss:$16 sps:$4 sm:$0xff]  }
  0x38   :  { %1675 = vmatprep.subr.bf16.mxu0 %v2954_v59  ;;  %1847 = vmatprep.subr.bf16.mxu1 %v2956_v60  ;;  %v3038_v59 = vld [vmem:[%s4271_s1 + $0x380] ss:$16 sps:$4 sm:$0xff]   ;;  %v3041_v60 = vld [vmem:[%s4271_s1 + $0x388] ss:$16 sps:$4 sm:$0xff]  }
  0x3b   :  { %1676 = vmatpush1.bf16.msra.mxu0 %v2958_v61  ;;  %1848 = vmatpush1.bf16.msra.mxu1 %v2959_v62  ;;  %v3046_v61 = vld [vmem:[%s4271_s1 + $0x3a4] ss:$16 sps:$4 sm:$0xff]   ;;  %v3049_v62 = vld [vmem:[%s4271_s1 + $0x3ac] ss:$16 sps:$4 sm:$0xff]  }
  0x3c   :  { %1677 = vmatprep.subr.bf16.mxu0 %v2960_v63  ;;  %1849 = vmatprep.subr.bf16.mxu1 %v2962_v0  ;;  %v3044_v63 = vld [vmem:[%s4271_s1 + $0x3a0] ss:$16 sps:$4 sm:$0xff]   ;;  %v3047_v0 = vld [vmem:[%s4271_s1 + $0x3a8] ss:$16 sps:$4 sm:$0xff]  }
  0x3f   :  { %1678 = vmatpush1.bf16.msra.mxu0 %v2964_v1  ;;  %1850 = vmatpush1.bf16.msra.mxu1 %v2965_v2  ;;  %v3052_v1 = vld [vmem:[%s4271_s1 + $0x3c4] ss:$16 sps:$4 sm:$0xff]   ;;  %v3055_v2 = vld [vmem:[%s4271_s1 + $0x3cc] ss:$16 sps:$4 sm:$0xff]  }
  0x40   :  { %1690 = vmatprep.subr.bf16.mxu0 %v2968_v3  ;;  %1862 = vmatprep.subr.bf16.mxu1 %v2971_v6  ;;  %v3050_v3 = vld [vmem:[%s4271_s1 + $0x3c0] ss:$16 sps:$4 sm:$0xff]   ;;  %v3061_v6 = vld [vmem:[%s4271_s1 + $0x3ec] ss:$16 sps:$4 sm:$0xff]  }
  0x42   :  { %1680 = vmatmul.mubr.bf16.vlgmr.msra.gmra.mrb[0].mxu0 %v81_v9  ;;  %1852 = vmatmul.mubr.bf16.vlgmr.msra.gmra.mrb[0].mxu1 %v81_v9  ;;  %v3064_v9 = vld [vmem:[%s4271_s1 + $0x404] ss:$16 sps:$4 sm:$0xff]  }
  0x43   :  { %1691 = vmatpush1.bf16.msra.mxu0 %v2966_v7  ;;  %1863 = vmatpush1.bf16.msra.mxu1 %v2969_v8  ;;  %v3056_v7 = vld [vmem:[%s4271_s1 + $0x3e0] ss:$16 sps:$4 sm:$0xff]   ;;  %v3059_v8 = vld [vmem:[%s4271_s1 + $0x3e8] ss:$16 sps:$4 sm:$0xff]  }
  0x44   :  { %1692 = vmatprep.subr.bf16.mxu0 %v2974_v10  ;;  %1864 = vmatprep.subr.bf16.mxu1 %v2977_v11  ;;  %v67_v10 = vld [vmem:[%s4272_s0 + $0x10] sm:$0xff] }
  0x45   :  { %1722 = vmatprep.mubr.bf16.mxu0 %v84_v36  ;;  %1894 = vmatprep.mubr.bf16.mxu1 %v84_v36  ;;  %v75_v11 = vld [vmem:[%s4272_s0 + $0x50] sm:$0xff]  ;;  %v3097_v36 = vld [vmem:[%s4271_s1 + $0x4ac] ss:$16 sps:$4 sm:$0xff]  }
  0x47   :  { %1693 = vmatpush1.bf16.msra.mxu0 %v2972_v12  ;;  %1865 = vmatpush1.bf16.msra.mxu1 %v2975_v13  ;;  %v3067_v12 = vld [vmem:[%s4271_s1 + $0x40c] ss:$16 sps:$4 sm:$0xff]   ;;  %v3062_v13 = vld [vmem:[%s4271_s1 + $0x400] ss:$16 sps:$4 sm:$0xff]  }
  0x48   :  { %1694 = vmatprep.subr.bf16.mxu0 %v2980_v14  ;;  %1866 = vmatprep.subr.bf16.mxu1 %v2983_v15  ;;  %v3065_v14 = vld [vmem:[%s4271_s1 + $0x408] ss:$16 sps:$4 sm:$0xff]   ;;  %v83_v15 = vpack.c.bf16 %v75_v11, %v67_v10  ;;  %v3154_v11 = vld [vmem:[%s4271_s1 + $0x5e4] ss:$16 sps:$4 sm:$0xff]  }
  0x49   :  { %v3149_v10 = vld [vmem:[%s4271_s1 + $0x5c8] ss:$16 sps:$4 sm:$0xff]  }
  0x4b   :  { %1695 = vmatpush1.bf16.msra.mxu0 %v2978_v16  ;;  %1867 = vmatpush1.bf16.msra.mxu1 %v2981_v17  ;;  %v3070_v16 = vld [vmem:[%s4271_s1 + $0x424] ss:$16 sps:$4 sm:$0xff]   ;;  %v3073_v17 = vld [vmem:[%s4271_s1 + $0x42c] ss:$16 sps:$4 sm:$0xff]  }
  0x4c   :  { %1696 = vmatprep.subr.bf16.mxu0 %v2986_v18  ;;  %1868 = vmatprep.subr.bf16.mxu1 %v2989_v19  ;;  %v70_v18 = vld [vmem:[%s4272_s0 + $0x28] sm:$0xff] }
  0x4d   :  { %v78_v19 = vld [vmem:[%s4272_s0 + $0x68] sm:$0xff] }
  0x4f   :  { %1697 = vmatpush1.bf16.msra.mxu0 %v2984_v20  ;;  %1869 = vmatpush1.bf16.msra.mxu1 %v2987_v21  ;;  %v3068_v20 = vld [vmem:[%s4271_s1 + $0x420] ss:$16 sps:$4 sm:$0xff]   ;;  %v3071_v21 = vld [vmem:[%s4271_s1 + $0x428] ss:$16 sps:$4 sm:$0xff]  }
  0x50   :  { %1698 = vmatprep.subr.bf16.mxu0 %v2992_v22  ;;  %1870 = vmatprep.subr.bf16.mxu1 %v2995_v23  ;;  %v86_v22 = vpack.c.bf16 %v78_v19, %v70_v18  ;;  %v3076_v23 = vld [vmem:[%s4271_s1 + $0x444] ss:$16 sps:$4 sm:$0xff]   ;;  %v3163_v18 = vld [vmem:[%s4271_s1 + $0x60c] ss:$16 sps:$4 sm:$0xff]   ;;  %v3158_v19 = vld [vmem:[%s4271_s1 + $0x600] ss:$16 sps:$4 sm:$0xff]  }
  0x53   :  { %1699 = vmatpush1.bf16.msra.mxu0 %v2990_v24  ;;  %1871 = vmatpush1.bf16.msra.mxu1 %v2993_v25  ;;  %v3079_v24 = vld [vmem:[%s4271_s1 + $0x44c] ss:$16 sps:$4 sm:$0xff]   ;;  %v3074_v25 = vld [vmem:[%s4271_s1 + $0x440] ss:$16 sps:$4 sm:$0xff]  }
  0x54   :  { %1700 = vmatprep.subr.bf16.mxu0 %v2998_v26  ;;  %1872 = vmatprep.subr.bf16.mxu1 %v3001_v27  ;;  %v3077_v26 = vld [vmem:[%s4271_s1 + $0x448] ss:$16 sps:$4 sm:$0xff]   ;;  %v3082_v27 = vld [vmem:[%s4271_s1 + $0x464] ss:$16 sps:$4 sm:$0xff]  }
  0x57   :  { %1701 = vmatpush1.bf16.msra.mxu0 %v2996_v28  ;;  %1873 = vmatpush1.bf16.msra.mxu1 %v2999_v29  ;;  %v3085_v28 = vld [vmem:[%s4271_s1 + $0x46c] ss:$16 sps:$4 sm:$0xff]   ;;  %v3080_v29 = vld [vmem:[%s4271_s1 + $0x460] ss:$16 sps:$4 sm:$0xff]  }
  0x58   :  { %1702 = vmatprep.subr.bf16.mxu0 %v3004_v30  ;;  %1874 = vmatprep.subr.bf16.mxu1 %v3007_v31  ;;  %v3083_v30 = vld [vmem:[%s4271_s1 + $0x468] ss:$16 sps:$4 sm:$0xff]   ;;  %v3088_v31 = vld [vmem:[%s4271_s1 + $0x484] ss:$16 sps:$4 sm:$0xff]  }
  0x5b   :  { %1703 = vmatpush1.bf16.msra.mxu0 %v3002_v34  ;;  %1875 = vmatpush1.bf16.msra.mxu1 %v3005_v35  ;;  %v3089_v34 = vld [vmem:[%s4271_s1 + $0x488] ss:$16 sps:$4 sm:$0xff]   ;;  %v3094_v35 = vld [vmem:[%s4271_s1 + $0x4a4] ss:$16 sps:$4 sm:$0xff]  }
  0x5c   :  { %1704 = vmatprep.subr.bf16.mxu0 %v3010_v37  ;;  %1876 = vmatprep.subr.bf16.mxu1 %v3013_v38  ;;  %v3092_v37 = vld [vmem:[%s4271_s1 + $0x4a0] ss:$16 sps:$4 sm:$0xff]   ;;  %v3095_v38 = vld [vmem:[%s4271_s1 + $0x4a8] ss:$16 sps:$4 sm:$0xff]  }
  0x5f   :  { %1705 = vmatpush1.bf16.msra.mxu0 %v3008_v39  ;;  %1877 = vmatpush1.bf16.msra.mxu1 %v3011_v40  ;;  %v3100_v39 = vld [vmem:[%s4271_s1 + $0x4c4] ss:$16 sps:$4 sm:$0xff]   ;;  %v3103_v40 = vld [vmem:[%s4271_s1 + $0x4cc] ss:$16 sps:$4 sm:$0xff]  }
  0x60   :  { %1706 = vmatprep.subr.bf16.mxu0 %v3016_v41  ;;  %1878 = vmatprep.subr.bf16.mxu1 %v3019_v42  ;;  %v3098_v41 = vld [vmem:[%s4271_s1 + $0x4c0] ss:$16 sps:$4 sm:$0xff]   ;;  %v3101_v42 = vld [vmem:[%s4271_s1 + $0x4c8] ss:$16 sps:$4 sm:$0xff]  }
  0x63   :  { %1707 = vmatpush1.bf16.msra.mxu0 %v3014_v43  ;;  %1879 = vmatpush1.bf16.msra.mxu1 %v3017_v44  ;;  %v3106_v43 = vld [vmem:[%s4271_s1 + $0x4e4] ss:$16 sps:$4 sm:$0xff]   ;;  %v3109_v44 = vld [vmem:[%s4271_s1 + $0x4ec] ss:$16 sps:$4 sm:$0xff]  }
  0x64   :  { %1708 = vmatprep.subr.bf16.mxu0 %v3022_v45  ;;  %1880 = vmatprep.subr.bf16.mxu1 %v3025_v46  ;;  %v3104_v45 = vld [vmem:[%s4271_s1 + $0x4e0] ss:$16 sps:$4 sm:$0xff]   ;;  %v3107_v46 = vld [vmem:[%s4271_s1 + $0x4e8] ss:$16 sps:$4 sm:$0xff]  }
  0x67   :  { %1709 = vmatpush1.bf16.msra.mxu0 %v3020_v47  ;;  %1881 = vmatpush1.bf16.msra.mxu1 %v3023_v48  ;;  %v3112_v47 = vld [vmem:[%s4271_s1 + $0x504] ss:$16 sps:$4 sm:$0xff]   ;;  %v3115_v48 = vld [vmem:[%s4271_s1 + $0x50c] ss:$16 sps:$4 sm:$0xff]  }
  0x68   :  { %1710 = vmatprep.subr.bf16.mxu0 %v3028_v49  ;;  %1882 = vmatprep.subr.bf16.mxu1 %v3031_v50  ;;  %v3110_v49 = vld [vmem:[%s4271_s1 + $0x500] ss:$16 sps:$4 sm:$0xff]   ;;  %v3113_v50 = vld [vmem:[%s4271_s1 + $0x508] ss:$16 sps:$4 sm:$0xff]  }
  0x6b   :  { %1711 = vmatpush1.bf16.msra.mxu0 %v3026_v51  ;;  %1883 = vmatpush1.bf16.msra.mxu1 %v3029_v52  ;;  %v3118_v51 = vld [vmem:[%s4271_s1 + $0x524] ss:$16 sps:$4 sm:$0xff]   ;;  %v3121_v52 = vld [vmem:[%s4271_s1 + $0x52c] ss:$16 sps:$4 sm:$0xff]  }
  0x6c   :  { %1712 = vmatprep.subr.bf16.mxu0 %v3034_v53  ;;  %1884 = vmatprep.subr.bf16.mxu1 %v3037_v54  ;;  %v3116_v53 = vld [vmem:[%s4271_s1 + $0x520] ss:$16 sps:$4 sm:$0xff]   ;;  %v3119_v54 = vld [vmem:[%s4271_s1 + $0x528] ss:$16 sps:$4 sm:$0xff]  }
  0x6f   :  { %1713 = vmatpush1.bf16.msra.mxu0 %v3032_v55  ;;  %1885 = vmatpush1.bf16.msra.mxu1 %v3035_v56  ;;  %v3124_v55 = vld [vmem:[%s4271_s1 + $0x544] ss:$16 sps:$4 sm:$0xff]   ;;  %v3127_v56 = vld [vmem:[%s4271_s1 + $0x54c] ss:$16 sps:$4 sm:$0xff]  }
  0x70   :  { %1714 = vmatprep.subr.bf16.mxu0 %v3040_v57  ;;  %1886 = vmatprep.subr.bf16.mxu1 %v3043_v58  ;;  %v3122_v57 = vld [vmem:[%s4271_s1 + $0x540] ss:$16 sps:$4 sm:$0xff]   ;;  %v3125_v58 = vld [vmem:[%s4271_s1 + $0x548] ss:$16 sps:$4 sm:$0xff]  }
  0x73   :  { %1715 = vmatpush1.bf16.msra.mxu0 %v3038_v59  ;;  %1887 = vmatpush1.bf16.msra.mxu1 %v3041_v60  ;;  %v3130_v59 = vld [vmem:[%s4271_s1 + $0x564] ss:$16 sps:$4 sm:$0xff]   ;;  %v3133_v60 = vld [vmem:[%s4271_s1 + $0x56c] ss:$16 sps:$4 sm:$0xff]  }
  0x74   :  { %1716 = vmatprep.subr.bf16.mxu0 %v3046_v61  ;;  %1888 = vmatprep.subr.bf16.mxu1 %v3049_v62  ;;  %v3128_v61 = vld [vmem:[%s4271_s1 + $0x560] ss:$16 sps:$4 sm:$0xff]   ;;  %v3131_v62 = vld [vmem:[%s4271_s1 + $0x568] ss:$16 sps:$4 sm:$0xff]  }
  0x77   :  { %1717 = vmatpush1.bf16.msra.mxu0 %v3044_v63  ;;  %1889 = vmatpush1.bf16.msra.mxu1 %v3047_v0  ;;  %v3136_v63 = vld [vmem:[%s4271_s1 + $0x584] ss:$16 sps:$4 sm:$0xff]   ;;  %v3139_v0 = vld [vmem:[%s4271_s1 + $0x58c] ss:$16 sps:$4 sm:$0xff]  }
  0x78   :  { %1718 = vmatprep.subr.bf16.mxu0 %v3052_v1  ;;  %1890 = vmatprep.subr.bf16.mxu1 %v3055_v2  ;;  %v3134_v1 = vld [vmem:[%s4271_s1 + $0x580] ss:$16 sps:$4 sm:$0xff]   ;;  %v3137_v2 = vld [vmem:[%s4271_s1 + $0x588] ss:$16 sps:$4 sm:$0xff]  }
  0x7b   :  { %1719 = vmatpush1.bf16.msra.mxu0 %v3050_v3  ;;  %1891 = vmatpush1.bf16.msra.mxu1 %v3053_v4  ;;  %v3142_v3 = vld [vmem:[%s4271_s1 + $0x5a4] ss:$16 sps:$4 sm:$0xff]   ;;  %v3145_v4 = vld [vmem:[%s4271_s1 + $0x5ac] ss:$16 sps:$4 sm:$0xff]  }
  0x7c   :  { %1720 = vmatprep.subr.bf16.mxu0 %v3058_v5  ;;  %1892 = vmatprep.subr.bf16.mxu1 %v3061_v6  ;;  %v3140_v5 = vld [vmem:[%s4271_s1 + $0x5a0] ss:$16 sps:$4 sm:$0xff]   ;;  %v3143_v6 = vld [vmem:[%s4271_s1 + $0x5a8] ss:$16 sps:$4 sm:$0xff]  }
  0x7f   :  { %1721 = vmatpush1.bf16.msra.mxu0 %v3056_v7  ;;  %1893 = vmatpush1.bf16.msra.mxu1 %v3059_v8  ;;  %v3148_v7 = vld [vmem:[%s4271_s1 + $0x5c4] ss:$16 sps:$4 sm:$0xff]   ;;  %v3151_v8 = vld [vmem:[%s4271_s1 + $0x5cc] ss:$16 sps:$4 sm:$0xff]  }
  0x80   :  { %1733 = vmatprep.subr.bf16.mxu0 %v3064_v9  ;;  %1905 = vmatprep.subr.bf16.mxu1 %v3067_v12  ;;  %v3146_v9 = vld [vmem:[%s4271_s1 + $0x5c0] ss:$16 sps:$4 sm:$0xff]   ;;  %v3157_v12 = vld [vmem:[%s4271_s1 + $0x5ec] ss:$16 sps:$4 sm:$0xff]  }
  0x82   :  { %1723 = vmatmul.mubr.bf16.vlgmr.msra.gmra.mrb[0].mxu0 %v83_v15  ;;  %1895 = vmatmul.mubr.bf16.vlgmr.msra.gmra.mrb[0].mxu1 %v83_v15  ;;  %v3160_v15 = vld [vmem:[%s4271_s1 + $0x604] ss:$16 sps:$4 sm:$0xff]  }
  0x83   :  { %1734 = vmatpush1.bf16.msra.mxu0 %v3062_v13  ;;  %1906 = vmatpush1.bf16.msra.mxu1 %v3065_v14  ;;  %v3152_v13 = vld [vmem:[%s4271_s1 + $0x5e0] ss:$16 sps:$4 sm:$0xff]   ;;  %v3155_v14 = vld [vmem:[%s4271_s1 + $0x5e8] ss:$16 sps:$4 sm:$0xff]  }
  0x84   :  { %1735 = vmatprep.subr.bf16.mxu0 %v3070_v16  ;;  %1907 = vmatprep.subr.bf16.mxu1 %v3073_v17  ;;  %v69_v16 = vld [vmem:[%s4272_s0 + $0x20] sm:$0xff] }
  0x85   :  { %1765 = vmatprep.mubr.bf16.mxu0 %v86_v22  ;;  %1937 = vmatprep.mubr.bf16.mxu1 %v86_v22  ;;  %v77_v17 = vld [vmem:[%s4272_s0 + $0x60] sm:$0xff] }
  0x86   :  { %v85_v22 = vpack.c.bf16 %v77_v17, %v69_v16  ;;  %v3245_v16 = vld [vmem:[%s4271_s1 + $0x7c8] ss:$16 sps:$4 sm:$0xff]   ;;  %v3250_v17 = vld [vmem:[%s4271_s1 + $0x7e4] ss:$16 sps:$4 sm:$0xff]  }
  0x87   :  { %1736 = vmatpush1.bf16.msra.mxu0 %v3068_v20  ;;  %1908 = vmatpush1.bf16.msra.mxu1 %v3071_v21  ;;  %v3161_v20 = vld [vmem:[%s4271_s1 + $0x608] ss:$16 sps:$4 sm:$0xff]  }
  0x88   :  { %1737 = vmatprep.subr.bf16.mxu0 %v3076_v23  ;;  %1909 = vmatprep.subr.bf16.mxu1 %v3079_v24  ;;  %v72_v21 = vld [vmem:[%s4272_s0 + $0x38] sm:$0xff]  ;;  %v3166_v24 = vld [vmem:[%s4271_s1 + $0x624] ss:$16 sps:$4 sm:$0xff]  }
  0x89   :  { %v80_v23 = vld [vmem:[%s4272_s0 + $0x78] sm:$0xff] }
  0x8b   :  { %1738 = vmatpush1.bf16.msra.mxu0 %v3074_v25  ;;  %1910 = vmatpush1.bf16.msra.mxu1 %v3077_v26  ;;  %v3169_v25 = vld [vmem:[%s4271_s1 + $0x62c] ss:$16 sps:$4 sm:$0xff]   ;;  %v3164_v26 = vld [vmem:[%s4271_s1 + $0x620] ss:$16 sps:$4 sm:$0xff]  }
  0x8c   :  { %1739 = vmatprep.subr.bf16.mxu0 %v3082_v27  ;;  %1911 = vmatprep.subr.bf16.mxu1 %v3085_v28  ;;  %v88_v27 = vpack.c.bf16 %v80_v23, %v72_v21  ;;  %v3167_v28 = vld [vmem:[%s4271_s1 + $0x628] ss:$16 sps:$4 sm:$0xff]   ;;  %v71_v21 = vld [vmem:[%s4272_s0 + $0x30] sm:$0xff]  ;;  %v3254_v23 = vld [vmem:[%s4273_s3 + $0x40] sm:$0xff]  }
  0x8f   :  { %1740 = vmatpush1.bf16.msra.mxu0 %v3080_v29  ;;  %1912 = vmatpush1.bf16.msra.mxu1 %v3083_v30  ;;  %v3172_v29 = vld [vmem:[%s4271_s1 + $0x644] ss:$16 sps:$4 sm:$0xff]   ;;  %v3175_v30 = vld [vmem:[%s4271_s1 + $0x64c] ss:$16 sps:$4 sm:$0xff]  }
  0x90   :  { %1741 = vmatprep.subr.bf16.mxu0 %v3088_v31  ;;  %1913 = vmatprep.subr.bf16.mxu1 %v3091_v32  ;;  %v3170_v31 = vld [vmem:[%s4271_s1 + $0x640] ss:$16 sps:$4 sm:$0xff]   ;;  %v3173_v32 = vld [vmem:[%s4271_s1 + $0x648] ss:$16 sps:$4 sm:$0xff]  }
  0x93   :  { %1742 = vmatpush1.bf16.msra.mxu0 %v3086_v33  ;;  %1914 = vmatpush1.bf16.msra.mxu1 %v3089_v34  ;;  %v3178_v33 = vld [vmem:[%s4271_s1 + $0x664] ss:$16 sps:$4 sm:$0xff]   ;;  %v3181_v34 = vld [vmem:[%s4271_s1 + $0x66c] ss:$16 sps:$4 sm:$0xff]  }
  0x94   :  { %1743 = vmatprep.subr.bf16.mxu0 %v3094_v35  ;;  %1915 = vmatprep.subr.bf16.mxu1 %v3097_v36  ;;  %v3176_v35 = vld [vmem:[%s4271_s1 + $0x660] ss:$16 sps:$4 sm:$0xff]   ;;  %v3179_v36 = vld [vmem:[%s4271_s1 + $0x668] ss:$16 sps:$4 sm:$0xff]  }
  0x97   :  { %1744 = vmatpush1.bf16.msra.mxu0 %v3092_v37  ;;  %1916 = vmatpush1.bf16.msra.mxu1 %v3095_v38  ;;  %v3184_v37 = vld [vmem:[%s4271_s1 + $0x684] ss:$16 sps:$4 sm:$0xff]   ;;  %v3187_v38 = vld [vmem:[%s4271_s1 + $0x68c] ss:$16 sps:$4 sm:$0xff]  }
  0x98   :  { %1745 = vmatprep.subr.bf16.mxu0 %v3100_v39  ;;  %1917 = vmatprep.subr.bf16.mxu1 %v3103_v40  ;;  %v3182_v39 = vld [vmem:[%s4271_s1 + $0x680] ss:$16 sps:$4 sm:$0xff]   ;;  %v3185_v40 = vld [vmem:[%s4271_s1 + $0x688] ss:$16 sps:$4 sm:$0xff]  }
  0x9b   :  { %1746 = vmatpush1.bf16.msra.mxu0 %v3098_v41  ;;  %1918 = vmatpush1.bf16.msra.mxu1 %v3101_v42  ;;  %v3190_v41 = vld [vmem:[%s4271_s1 + $0x6a4] ss:$16 sps:$4 sm:$0xff]   ;;  %v3193_v42 = vld [vmem:[%s4271_s1 + $0x6ac] ss:$16 sps:$4 sm:$0xff]  }
  0x9c   :  { %1747 = vmatprep.subr.bf16.mxu0 %v3106_v43  ;;  %1919 = vmatprep.subr.bf16.mxu1 %v3109_v44  ;;  %v3188_v43 = vld [vmem:[%s4271_s1 + $0x6a0] ss:$16 sps:$4 sm:$0xff]   ;;  %v3191_v44 = vld [vmem:[%s4271_s1 + $0x6a8] ss:$16 sps:$4 sm:$0xff]  }
  0x9f   :  { %1748 = vmatpush1.bf16.msra.mxu0 %v3104_v45  ;;  %1920 = vmatpush1.bf16.msra.mxu1 %v3107_v46  ;;  %v3196_v45 = vld [vmem:[%s4271_s1 + $0x6c4] ss:$16 sps:$4 sm:$0xff]   ;;  %v3199_v46 = vld [vmem:[%s4271_s1 + $0x6cc] ss:$16 sps:$4 sm:$0xff]  }
  0xa0   :  { %1749 = vmatprep.subr.bf16.mxu0 %v3112_v47  ;;  %1921 = vmatprep.subr.bf16.mxu1 %v3115_v48  ;;  %v3194_v47 = vld [vmem:[%s4271_s1 + $0x6c0] ss:$16 sps:$4 sm:$0xff]   ;;  %v3197_v48 = vld [vmem:[%s4271_s1 + $0x6c8] ss:$16 sps:$4 sm:$0xff]  }
  0xa3   :  { %1750 = vmatpush1.bf16.msra.mxu0 %v3110_v49  ;;  %1922 = vmatpush1.bf16.msra.mxu1 %v3113_v50  ;;  %v3202_v49 = vld [vmem:[%s4271_s1 + $0x6e4] ss:$16 sps:$4 sm:$0xff]   ;;  %v3205_v50 = vld [vmem:[%s4271_s1 + $0x6ec] ss:$16 sps:$4 sm:$0xff]  }
  0xa4   :  { %1751 = vmatprep.subr.bf16.mxu0 %v3118_v51  ;;  %1923 = vmatprep.subr.bf16.mxu1 %v3121_v52  ;;  %v3200_v51 = vld [vmem:[%s4271_s1 + $0x6e0] ss:$16 sps:$4 sm:$0xff]   ;;  %v3203_v52 = vld [vmem:[%s4271_s1 + $0x6e8] ss:$16 sps:$4 sm:$0xff]  }
  0xa7   :  { %1752 = vmatpush1.bf16.msra.mxu0 %v3116_v53  ;;  %1924 = vmatpush1.bf16.msra.mxu1 %v3119_v54  ;;  %v3208_v53 = vld [vmem:[%s4271_s1 + $0x704] ss:$16 sps:$4 sm:$0xff]   ;;  %v3211_v54 = vld [vmem:[%s4271_s1 + $0x70c] ss:$16 sps:$4 sm:$0xff]  }
  0xa8   :  { %1753 = vmatprep.subr.bf16.mxu0 %v3124_v55  ;;  %1925 = vmatprep.subr.bf16.mxu1 %v3127_v56  ;;  %v3206_v55 = vld [vmem:[%s4271_s1 + $0x700] ss:$16 sps:$4 sm:$0xff]   ;;  %v3209_v56 = vld [vmem:[%s4271_s1 + $0x708] ss:$16 sps:$4 sm:$0xff]  }
  0xab   :  { %1754 = vmatpush1.bf16.msra.mxu0 %v3122_v57  ;;  %1926 = vmatpush1.bf16.msra.mxu1 %v3125_v58  ;;  %v3214_v57 = vld [vmem:[%s4271_s1 + $0x724] ss:$16 sps:$4 sm:$0xff]   ;;  %v3217_v58 = vld [vmem:[%s4271_s1 + $0x72c] ss:$16 sps:$4 sm:$0xff]  }
  0xac   :  { %1755 = vmatprep.subr.bf16.mxu0 %v3130_v59  ;;  %1927 = vmatprep.subr.bf16.mxu1 %v3133_v60  ;;  %v3212_v59 = vld [vmem:[%s4271_s1 + $0x720] ss:$16 sps:$4 sm:$0xff]   ;;  %v3215_v60 = vld [vmem:[%s4271_s1 + $0x728] ss:$16 sps:$4 sm:$0xff]  }
  0xaf   :  { %1756 = vmatpush1.bf16.msra.mxu0 %v3128_v61  ;;  %1928 = vmatpush1.bf16.msra.mxu1 %v3131_v62  ;;  %v3220_v61 = vld [vmem:[%s4271_s1 + $0x744] ss:$16 sps:$4 sm:$0xff]   ;;  %v3223_v62 = vld [vmem:[%s4271_s1 + $0x74c] ss:$16 sps:$4 sm:$0xff]  }
  0xb0   :  { %1757 = vmatprep.subr.bf16.mxu0 %v3136_v63  ;;  %1929 = vmatprep.subr.bf16.mxu1 %v3139_v0  ;;  %v3218_v63 = vld [vmem:[%s4271_s1 + $0x740] ss:$16 sps:$4 sm:$0xff]   ;;  %v3221_v0 = vld [vmem:[%s4271_s1 + $0x748] ss:$16 sps:$4 sm:$0xff]  }
  0xb3   :  { %1758 = vmatpush1.bf16.msra.mxu0 %v3134_v1  ;;  %1930 = vmatpush1.bf16.msra.mxu1 %v3137_v2  ;;  %v3226_v1 = vld [vmem:[%s4271_s1 + $0x764] ss:$16 sps:$4 sm:$0xff]   ;;  %v3229_v2 = vld [vmem:[%s4271_s1 + $0x76c] ss:$16 sps:$4 sm:$0xff]  }
  0xb4   :  { %1759 = vmatprep.subr.bf16.mxu0 %v3142_v3  ;;  %1931 = vmatprep.subr.bf16.mxu1 %v3145_v4  ;;  %v3224_v3 = vld [vmem:[%s4271_s1 + $0x760] ss:$16 sps:$4 sm:$0xff]   ;;  %v3227_v4 = vld [vmem:[%s4271_s1 + $0x768] ss:$16 sps:$4 sm:$0xff]  }
  0xb7   :  { %1760 = vmatpush1.bf16.msra.mxu0 %v3140_v5  ;;  %1932 = vmatpush1.bf16.msra.mxu1 %v3143_v6  ;;  %v3232_v5 = vld [vmem:[%s4271_s1 + $0x784] ss:$16 sps:$4 sm:$0xff]   ;;  %v3235_v6 = vld [vmem:[%s4271_s1 + $0x78c] ss:$16 sps:$4 sm:$0xff]  }
  0xb8   :  { %1761 = vmatprep.subr.bf16.mxu0 %v3148_v7  ;;  %1933 = vmatprep.subr.bf16.mxu1 %v3151_v8  ;;  %v3230_v7 = vld [vmem:[%s4271_s1 + $0x780] ss:$16 sps:$4 sm:$0xff]   ;;  %v3233_v8 = vld [vmem:[%s4271_s1 + $0x788] ss:$16 sps:$4 sm:$0xff]  }
  0xbb   :  { %1762 = vmatpush1.bf16.msra.mxu0 %v3146_v9  ;;  %1934 = vmatpush1.bf16.msra.mxu1 %v3149_v10  ;;  %v3238_v9 = vld [vmem:[%s4271_s1 + $0x7a4] ss:$16 sps:$4 sm:$0xff]   ;;  %v3241_v10 = vld [vmem:[%s4271_s1 + $0x7ac] ss:$16 sps:$4 sm:$0xff]  }
  0xbc   :  { %1763 = vmatprep.subr.bf16.mxu0 %v3154_v11  ;;  %1935 = vmatprep.subr.bf16.mxu1 %v3157_v12  ;;  %v3236_v11 = vld [vmem:[%s4271_s1 + $0x7a0] ss:$16 sps:$4 sm:$0xff]   ;;  %v3239_v12 = vld [vmem:[%s4271_s1 + $0x7a8] ss:$16 sps:$4 sm:$0xff]  }
  0xbf   :  { %1764 = vmatpush1.bf16.msra.mxu0 %v3152_v13  ;;  %1936 = vmatpush1.bf16.msra.mxu1 %v3155_v14  ;;  %v3244_v13 = vld [vmem:[%s4271_s1 + $0x7c4] ss:$16 sps:$4 sm:$0xff]   ;;  %v3247_v14 = vld [vmem:[%s4271_s1 + $0x7cc] ss:$16 sps:$4 sm:$0xff]  }
  0xc0   :  { %1776 = vmatprep.subr.bf16.mxu0 %v3160_v15  ;;  %1948 = vmatprep.subr.bf16.mxu1 %v3163_v18  ;;  %v3242_v15 = vld [vmem:[%s4271_s1 + $0x7c0] ss:$16 sps:$4 sm:$0xff]   ;;  %v3253_v18 = vld [vmem:[%s4271_s1 + $0x7ec] ss:$16 sps:$4 sm:$0xff]  }
  0xc2   :  { %1766 = vmatmul.mubr.bf16.vlgmr.msra.gmra.mrb[0].mxu0 %v85_v22  ;;  %1938 = vmatmul.mubr.bf16.vlgmr.msra.gmra.mrb[0].mxu1 %v85_v22  ;;  %v79_v22 = vld [vmem:[%s4272_s0 + $0x70] sm:$0xff] }
  0xc3   :  { %1777 = vmatpush1.bf16.msra.mxu0 %v3158_v19  ;;  %1949 = vmatpush1.bf16.msra.mxu1 %v3161_v20  ;;  %v3248_v19 = vld [vmem:[%s4271_s1 + $0x7e0] ss:$16 sps:$4 sm:$0xff]   ;;  %v3251_v20 = vld [vmem:[%s4271_s1 + $0x7e8] ss:$16 sps:$4 sm:$0xff]  }
  0xc4   :  { %1778 = vmatprep.subr.bf16.mxu0 %v3166_v24  ;;  %1950 = vmatprep.subr.bf16.mxu1 %v3169_v25  ;;  %v3255_v24 = vld [vmem:[%s4273_s3 + $0xc0] sm:$0xff]   ;;  %v87_v25 = vpack.c.bf16 %v79_v22, %v71_v21 }
  0xc5   :  { %1808 = vmatprep.mubr.bf16.mxu0 %v88_v27  ;;  %1980 = vmatprep.mubr.bf16.mxu1 %v88_v27  ;;  %v3257_v27 = vld [vmem:[%s4273_s3 + $0x80] sm:$0xff]  }
  0xc7   :  { %1779 = vmatpush1.bf16.msra.mxu0 %v3164_v26  ;;  %1951 = vmatpush1.bf16.msra.mxu1 %v3167_v28  ;;  %v3256_v26 = vld [vmem:[%s4273_s3] sm:$0xff]   ;;  %v3258_v28 = vld [vmem:[%s4273_s3 + $0x48] sm:$0xff]  }
  0xc8   :  { %1780 = vmatprep.subr.bf16.mxu0 %v3172_v29  ;;  %1952 = vmatprep.subr.bf16.mxu1 %v3175_v30  ;;  %v3259_v29 = vld [vmem:[%s4273_s3 + $0xc8] sm:$0xff]  }
  0xc9   :  { %v3260_v30 = vld [vmem:[%s4273_s3 + $0x8] sm:$0xff]  }
  0xcb   :  { %1781 = vmatpush1.bf16.msra.mxu0 %v3170_v31  ;;  %1953 = vmatpush1.bf16.msra.mxu1 %v3173_v32  ;;  %v3261_v31 = vld [vmem:[%s4273_s3 + $0x88] sm:$0xff]   ;;  %v3262_v32 = vld [vmem:[%s4273_s3 + $0x50] sm:$0xff]  }
  0xcc   :  { %1782 = vmatprep.subr.bf16.mxu0 %v3178_v33  ;;  %1954 = vmatprep.subr.bf16.mxu1 %v3181_v34  ;;  %v3263_v33 = vld [vmem:[%s4273_s3 + $0xd0] sm:$0xff]  }
  0xcd   :  { %v3264_v34 = vld [vmem:[%s4273_s3 + $0x10] sm:$0xff]  }
  0xcf   :  { %1783 = vmatpush1.bf16.msra.mxu0 %v3176_v35  ;;  %1955 = vmatpush1.bf16.msra.mxu1 %v3179_v36  ;;  %v3265_v35 = vld [vmem:[%s4273_s3 + $0x90] sm:$0xff]   ;;  %v3266_v36 = vld [vmem:[%s4273_s3 + $0x58] sm:$0xff]  }
  0xd0   :  { %1784 = vmatprep.subr.bf16.mxu0 %v3184_v37  ;;  %1956 = vmatprep.subr.bf16.mxu1 %v3187_v38  ;;  %v3267_v37 = vld [vmem:[%s4273_s3 + $0xd8] sm:$0xff]  }
  0xd1   :  { %v3268_v38 = vld [vmem:[%s4273_s3 + $0x18] sm:$0xff]  }
  0xd3   :  { %1785 = vmatpush1.bf16.msra.mxu0 %v3182_v39  ;;  %1957 = vmatpush1.bf16.msra.mxu1 %v3185_v40  ;;  %v3269_v39 = vld [vmem:[%s4273_s3 + $0x98] sm:$0xff]   ;;  %v3270_v40 = vld [vmem:[%s4273_s3 + $0x60] sm:$0xff]  }
  0xd4   :  { %1786 = vmatprep.subr.bf16.mxu0 %v3190_v41  ;;  %1958 = vmatprep.subr.bf16.mxu1 %v3193_v42  ;;  %v3271_v41 = vld [vmem:[%s4273_s3 + $0xe0] sm:$0xff]  }
  0xd5   :  { %v3272_v42 = vld [vmem:[%s4273_s3 + $0x20] sm:$0xff]  }
  0xd7   :  { %1787 = vmatpush1.bf16.msra.mxu0 %v3188_v43  ;;  %1959 = vmatpush1.bf16.msra.mxu1 %v3191_v44  ;;  %v3273_v43 = vld [vmem:[%s4273_s3 + $0xa0] sm:$0xff]   ;;  %v3274_v44 = vld [vmem:[%s4273_s3 + $0x68] sm:$0xff]  }
  0xd8   :  { %1788 = vmatprep.subr.bf16.mxu0 %v3196_v45  ;;  %1960 = vmatprep.subr.bf16.mxu1 %v3199_v46  ;;  %v3275_v45 = vld [vmem:[%s4273_s3 + $0xe8] sm:$0xff]  }
  0xd9   :  { %v3276_v46 = vld [vmem:[%s4273_s3 + $0x28] sm:$0xff]  }
  0xdb   :  { %1789 = vmatpush1.bf16.msra.mxu0 %v3194_v47  ;;  %1961 = vmatpush1.bf16.msra.mxu1 %v3197_v48  ;;  %v3277_v47 = vld [vmem:[%s4273_s3 + $0xa8] sm:$0xff]   ;;  %v3278_v48 = vld [vmem:[%s4273_s3 + $0x70] sm:$0xff]  }
  0xdc   :  { %1790 = vmatprep.subr.bf16.mxu0 %v3202_v49  ;;  %1962 = vmatprep.subr.bf16.mxu1 %v3205_v50  ;;  %v3279_v49 = vld [vmem:[%s4273_s3 + $0xf0] sm:$0xff]  }
  0xdd   :  { %v3280_v50 = vld [vmem:[%s4273_s3 + $0x30] sm:$0xff]  }
  0xdf   :  { %1791 = vmatpush1.bf16.msra.mxu0 %v3200_v51  ;;  %1963 = vmatpush1.bf16.msra.mxu1 %v3203_v52  ;;  %v3281_v51 = vld [vmem:[%s4273_s3 + $0xb0] sm:$0xff]   ;;  %v3282_v52 = vld [vmem:[%s4273_s3 + $0x78] sm:$0xff]  }
  0xe0   :  { %1792 = vmatprep.subr.bf16.mxu0 %v3208_v53  ;;  %1964 = vmatprep.subr.bf16.mxu1 %v3211_v54  ;;  %v3283_v53 = vld [vmem:[%s4273_s3 + $0xf8] sm:$0xff]  }
  0xe1   :  { %v3284_v54 = vld [vmem:[%s4273_s3 + $0x38] sm:$0xff]  }
  0xe3   :  { %1793 = vmatpush1.bf16.msra.mxu0 %v3206_v55  ;;  %1965 = vmatpush1.bf16.msra.mxu1 %v3209_v56  ;;  %v3285_v55 = vld [vmem:[%s4273_s3 + $0xb8] sm:$0xff]   ;;  %v347_v56 = vlaneseq }
  0xe4   :  { %1794 = vmatprep.subr.bf16.mxu0 %v3214_v57  ;;  %1966 = vmatprep.subr.bf16.mxu1 %v3217_v58 }
  0xe5   :  { %v348_v57 = vshrl.u32 %v347_v56, 7 }
  0xe7   :  { %1795 = vmatpush1.bf16.msra.mxu0 %v3212_v59  ;;  %1967 = vmatpush1.bf16.msra.mxu1 %v3215_v60  ;;  %v349_v58 = vsub.s32 0, %v348_v57  ;;  %v357_v59 = vsub.s32 2, %v348_v57  ;;  %v345_v60 = vld [vmem:[%s4274_s2] sm:$0xf] }
  0xe8   :  { %1796 = vmatprep.subr.bf16.mxu0 %v3220_v61  ;;  %1968 = vmatprep.subr.bf16.mxu1 %v3223_v62  ;;  %v353_v61 = vsub.s32 1, %v348_v57  ;;  %v361_v62 = vsub.s32 3, %v348_v57 }
  0xeb   :  { %1797 = vmatpush1.bf16.msra.mxu0 %v3218_v63  ;;  %1969 = vmatpush1.bf16.msra.mxu1 %v3221_v0  ;;  %v350_v63 = vrot.slane %v345_v60, %v349_v58  ;;  %v358_v0 = vrot.slane %v345_v60, %v357_v59 }
  0xec   :  { %1798 = vmatprep.subr.bf16.mxu0 %v3226_v1  ;;  %1970 = vmatprep.subr.bf16.mxu1 %v3229_v2  ;;  %v354_v1 = vrot.slane %v345_v60, %v353_v61  ;;  %v362_v2 = vrot.slane %v345_v60, %v361_v62 }
  0xef   :  { %1799 = vmatpush1.bf16.msra.mxu0 %v3224_v3  ;;  %1971 = vmatpush1.bf16.msra.mxu1 %v3227_v4 }
  0xf0   :  { %1800 = vmatprep.subr.bf16.mxu0 %v3232_v5  ;;  %1972 = vmatprep.subr.bf16.mxu1 %v3235_v6 }
  0xf3   :  { %1801 = vmatpush1.bf16.msra.mxu0 %v3230_v7  ;;  %1973 = vmatpush1.bf16.msra.mxu1 %v3233_v8 }
  0xf4   :  { %1802 = vmatprep.subr.bf16.mxu0 %v3238_v9  ;;  %1974 = vmatprep.subr.bf16.mxu1 %v3241_v10 }
  0xf7   :  { %1803 = vmatpush1.bf16.msra.mxu0 %v3236_v11  ;;  %1975 = vmatpush1.bf16.msra.mxu1 %v3239_v12 }
  0xf8   :  { %1804 = vmatprep.subr.bf16.mxu0 %v3244_v13  ;;  %1976 = vmatprep.subr.bf16.mxu1 %v3247_v14 }
  0xfb   :  { %1805 = vmatpush1.bf16.msra.mxu0 %v3242_v15  ;;  %1977 = vmatpush1.bf16.msra.mxu1 %v3245_v16 }
  0xfc   :  { %1806 = vmatprep.subr.bf16.mxu0 %v3250_v17  ;;  %1978 = vmatprep.subr.bf16.mxu1 %v3253_v18 }
  0xff   :  { %1807 = vmatpush1.bf16.msra.mxu0 %v3248_v19  ;;  %1979 = vmatpush1.bf16.msra.mxu1 %v3251_v20 }
 0x100   :  { %2751 = vmatprep.subr.bf16.mxu0 %v3254_v23  ;;  %2773 = vmatprep.subr.bf16.mxu1 %v3255_v24 }
 0x102   :  { %1809 = vmatmul.mubr.bf16.vlgmr.msra.gmra.mrb[0].mxu0 %v87_v25  ;;  %1981 = vmatmul.mubr.bf16.vlgmr.msra.gmra.mrb[0].mxu1 %v87_v25 }
 0x103   :  { %2752 = vmatpush3.bf16.msra.mxu0 %v3256_v26  ;;  %2774 = vmatpush3.bf16.msra.mxu1 %v3257_v27 }
 0x104   :  { %2753 = vmatprep.subr.bf16.mxu0 %v3258_v28  ;;  %2775 = vmatprep.subr.bf16.mxu1 %v3259_v29 }
 0x107   :  { %2754 = vmatpush3.bf16.msra.mxu0 %v3260_v30  ;;  %2776 = vmatpush3.bf16.msra.mxu1 %v3261_v31  ;;  %v2368_v31 = vld [vmem:[%s4275_s5] sm:$0xff] }
 0x108   :  { %2755 = vmatprep.subr.bf16.mxu0 %v3262_v32  ;;  %2777 = vmatprep.subr.bf16.mxu1 %v3263_v33  ;;  %v2369_v32 = vld [vmem:[%s4275_s5 + $0x8] sm:$0xff]  ;;  %v3286_v33 = vmov 0.0  }
 0x109   :  { %64 = vst.msk [vmem:[#allocation2] sm:$0x1] %vm63_vm0, %v3286_v33 }
 0x10b   :  { %2756 = vmatpush3.bf16.msra.mxu0 %v3264_v34  ;;  %2778 = vmatpush3.bf16.msra.mxu1 %v3265_v35  ;;  %v2824_v34 = vpack.c.bf16 %v2369_v32, %v2368_v31  ;;  %v3287_v35 = vmov 0.0|0.0  }
 0x10c   :  { %2757 = vmatprep.subr.bf16.mxu0 %v3266_v36  ;;  %2779 = vmatprep.subr.bf16.mxu1 %v3267_v37  ;;  %v2370_v36 = vld [vmem:[%s4275_s5 + $0x10] sm:$0xff]  ;;  %v2371_v37 = vld [vmem:[%s4275_s5 + $0x18] sm:$0xff] }
 0x10f   :  { %2758 = vmatpush3.bf16.msra.mxu0 %v3268_v38  ;;  %2780 = vmatpush3.bf16.msra.mxu1 %v3269_v39  ;;  %v2827_v38 = vpack.c.bf16 %v2371_v37, %v2370_v36  ;;  %v2372_v39 = vld [vmem:[%s4275_s5 + $0x20] sm:$0xff] }
 0x110   :  { %2759 = vmatprep.subr.bf16.mxu0 %v3270_v40  ;;  %2781 = vmatprep.subr.bf16.mxu1 %v3271_v41  ;;  %v2373_v40 = vld [vmem:[%s4275_s5 + $0x28] sm:$0xff] }
 0x111   :  { %v2830_v41 = vpack.c.bf16 %v2373_v40, %v2372_v39 }
 0x113   :  { %2760 = vmatpush3.bf16.msra.mxu0 %v3272_v42  ;;  %2782 = vmatpush3.bf16.msra.mxu1 %v3273_v43  ;;  %v2374_v42 = vld [vmem:[%s4275_s5 + $0x30] sm:$0xff]  ;;  %v2375_v43 = vld [vmem:[%s4275_s5 + $0x38] sm:$0xff] }
 0x114   :  { %2761 = vmatprep.subr.bf16.mxu0 %v3274_v44  ;;  %2783 = vmatprep.subr.bf16.mxu1 %v3275_v45  ;;  %v2833_v44 = vpack.c.bf16 %v2375_v43, %v2374_v42 }
 0x117   :  { %2762 = vmatpush3.bf16.msra.mxu0 %v3276_v46  ;;  %2784 = vmatpush3.bf16.msra.mxu1 %v3277_v47  ;;  %v2717_v47 = vld [vmem:[%s4276_s4] ss:$0 sm:$0xff] }
 0x118   :  { %2763 = vmatprep.subr.bf16.mxu0 %v3278_v48  ;;  %2785 = vmatprep.subr.bf16.mxu1 %v3279_v49 }
 0x11b   :  { %2764 = vmatpush3.bf16.msra.mxu0 %v3280_v50  ;;  %2786 = vmatpush3.bf16.msra.mxu1 %v3281_v51 }
 0x11c   :  { %2765 = vmatprep.subr.bf16.mxu0 %v3282_v52  ;;  %2787 = vmatprep.subr.bf16.mxu1 %v3283_v53 }
 0x11f   :  { %2766 = vmatpush3.bf16.msra.mxu0 %v3284_v54  ;;  %2788 = vmatpush3.bf16.msra.mxu1 %v3285_v55 }
 0x120   :  { %2823 = vmatprep.subr.bf16.mxu0 %v3287_v35 }
 0x1d5   :  { %v1810_v3 = vpop.f32.mrb[0].mxu0  ;;  %v1982_v4 = vpop.f32.mrb[0].mxu1 }
 0x1d6   :  { %v2835_v5 = vadd.f32 %v1810_v3, %v350_v63  ;;  %v2839_v6 = vadd.f32 %v1982_v4, %v358_v0  ;;  %v1812_v7 = vpop.f32.mrb[1].mxu0  ;;  %v1984_v8 = vpop.f32.mrb[1].mxu1 }
 0x1d7   :  { %v2836_v9 = vadd.f32 %v1812_v7, %v354_v1  ;;  %v2840_v10 = vadd.f32 %v1984_v8, %v362_v2  ;;  %v1814_v11 = vpop.f32.mrb[2].mxu0  ;;  %v1986_v12 = vpop.f32.mrb[2].mxu1  ;;  %v2350_v8 = vld [vmem:[#allocation2] sm:$0x1] }
 0x1d8   :  { %v2837_v13 = vadd.f32 %v1814_v11, %v350_v63  ;;  %v2841_v14 = vadd.f32 %v1986_v12, %v358_v0  ;;  %v1816_v15 = vpop.f32.mrb[3].mxu0  ;;  %v1988_v16 = vpop.f32.mrb[3].mxu1  ;;  %v1991_v19 = vmax.f32 %v2835_v5, 0.0  ;;  %v1993_v20 = vmax.f32 %v2839_v6, 0.0 }
 0x1d9   :  { %v2838_v17 = vadd.f32 %v1816_v15, %v354_v1  ;;  %v2842_v18 = vadd.f32 %v1988_v16, %v362_v2  ;;  %v1992_v23 = vmax.f32 %v2836_v9, 0.0  ;;  %v1994_v24 = vmax.f32 %v2840_v10, 0.0 }
 0x1da   :  { %v1995_v21 = vmax.f32 %v2837_v13, 0.0  ;;  %v1997_v22 = vmax.f32 %v2841_v14, 0.0 }
 0x1db   :  { %v1996_v25 = vmax.f32 %v2838_v17, 0.0  ;;  %v1998_v26 = vmax.f32 %v2842_v18, 0.0 }
 0x1dc   :  { %v1999_v27 = vpack.c.bf16 %v1995_v21, %v1991_v19  ;;  %v2001_v28 = vpack.c.bf16 %v1997_v22, %v1993_v20 }
 0x1dd   :  { %v2000_v29 = vpack.c.bf16 %v1996_v25, %v1992_v23  ;;  %v2002_v30 = vpack.c.bf16 %v1998_v26, %v1994_v24 }
 0x1df   :  { %2298 = vmatprep.mubr.bf16.mxu0 %v2000_v29  ;;  %2339 = vmatprep.mubr.bf16.mxu1 %v2002_v30 }
 0x1e0   :  { %2299 = vmatmul.mubr.bf16.vlgmr.msra.gmra.mrb[4].mxu0 %v1999_v27  ;;  %2340 = vmatmul.mubr.bf16.vlgmr.msra.gmra.mrb[4].mxu1 %v2001_v28 }
 0x1e1   :  { %2825 = vmatpush3.bf16.msra.mxu0 %v2824_v34  ;;  %2820 = vmatprep.mubr.msk.f32.mxu0 %vm3288_vm1, %v3286_v33 }
 0x1e2   :  { %2826 = vmatprep.subr.bf16.mxu0 %v3287_v35 }
 0x1e5   :  { %2828 = vmatpush3.bf16.msra.mxu0 %v2827_v38 }
 0x1e6   :  { %2829 = vmatprep.subr.bf16.mxu0 %v3287_v35 }
 0x1e9   :  { %2831 = vmatpush3.bf16.msra.mxu0 %v2830_v41 }
 0x1ea   :  { %2832 = vmatprep.subr.bf16.mxu0 %v3287_v35 }
 0x1ed   :  { %2834 = vmatpush3.bf16.msra.mxu0 %v2833_v44 }
 0x2b3   :  { %v2767_v45 = vpop.f32.mrb[4].mxu0  ;;  %v2789_v46 = vpop.f32.mrb[4].mxu1 }
 0x2b4   :  { %v2768_v48 = vpop.f32.mrb[5].mxu0  ;;  %v2790_v49 = vpop.f32.mrb[5].mxu1 }
 0x2b5   :  { %v2769_v50 = vadd.f32 %v2768_v48, %v2767_v45  ;;  %v2791_v51 = vadd.f32 %v2790_v49, %v2789_v46  ;;  %v2770_v52 = vpop.f32.mrb[6].mxu0  ;;  %v2792_v53 = vpop.f32.mrb[6].mxu1 }
 0x2b6   :  { %v2771_v54 = vpop.f32.mrb[7].mxu0  ;;  %v2793_v55 = vpop.f32.mrb[7].mxu1 }
 0x2b7   :  { %v2301_v56 = vadd.f32 %v2769_v50, %v2717_v47  ;;  %v2772_v57 = vadd.f32 %v2771_v54, %v2770_v52  ;;  %v2794_v58 = vadd.f32 %v2793_v55, %v2792_v53 }
 0x2b9   :  { %v2342_v59 = vadd.f32 %v2791_v51, %v2301_v56  ;;  %v2304_v60 = vadd.f32 %v2772_v57, %v2717_v47 }
 0x2bb   :  { %v2348_v61 = vmax.f32 %v2342_v59, 0.0  ;;  %v2345_v62 = vadd.f32 %v2794_v58, %v2304_v60 }
 0x2bd   :  { %v2349_v63 = vmax.f32 %v2345_v62, 0.0  ;;  %v2352_v0 = vsel %vm2351_vm2, %v2348_v61, 0.0 }
 0x2bf   :  { %v2353_v1 = vsel %vm2351_vm2, %v2349_v63, 0.0 }
 0x2c0   :  { %v2354_v2 = vadd.f32 %v2353_v1, %v2352_v0 }
 0x2c2   :  { %v2355_v3 = vrot.slane %v2354_v2, 4 }
 0x2c4   :  { %v2356_v4 = vadd.f32 %v2355_v3, %v2354_v2 }
 0x2c6   :  { %v2357_v5 = vrot.slane %v2356_v4, 2 }
 0x2c8   :  { %v2358_v6 = vadd.f32 %v2357_v5, %v2356_v4 }
 0x2ca   :  { %v2359_v7 = vrot.slane %v2358_v6, 1 }
 0x2cc   :  { %v2360_v9 = vadd.f32 %v2359_v7, %v2358_v6 }
 0x2ce   :  { %v2361_v10 = vadd.f32 %v2360_v9, %v2350_v8 }
 0x2d0   :  { %2363 = vst.msk [vmem:[#allocation2] sm:$0x1] %vm63_vm0, %v2361_v10 }
 0x2d7   :  { %v2367_v11 = vld [vmem:[#allocation2] sm:$0x1] }
 0x2d8   :  { %2821 = vmatmul.mubr.msk.f32.vlgmr.msra.gmra.mrb[8].mxu0 %vm2351_vm2, %v2367_v11 }
 0x3ab   :  { %v2445_v12 = vpop.f32.mrb[8].mxu0 }
 0x3ac   :  { %2450 = vst.msk [vmem:[%s4277_s6] sm:$0x1] %vm2449_vm3, %v2445_v12  ;;  %v2822_v13 = vpop.f32.mrb[9].mxu0 }

</bundles_post_ra>
